<compile_context>
chip_gen: v5e
topology: v5e:2x2
jax: 0.10.0
libtpu: 0.0.40
codegen_flags: <defaults>
</compile_context>

<pallas_src>
import functools

import jax
import jax.numpy as jnp
from jax.experimental import pallas as pl
from jax.experimental.pallas import tpu as pltpu


def _round_up(x, m):
    return ((x + m - 1) // m) * m


def ae_kernel(x_ref, we_ref, be_ref, wd_ref, bd_ref, o_ref):
    # x_ref:  (TILE_N, D)   activation tile (native dtype, e.g. f32)
    # we_ref: (D, B) bf16   encoder weight,   be_ref: (1, B) f32 encoder bias
    # wd_ref: (B, D) bf16   decoder weight,   bd_ref: (1, D) f32 decoder bias
    # o_ref:  (TILE_N, D)   reconstruction tile

    # --- encoder: Linear + ReLU (bf16 MXU matmul, f32 accumulation) ---
    x = x_ref[...].astype(jnp.bfloat16)
    h = jnp.dot(x, we_ref[...], preferred_element_type=jnp.float32)
    h = jnp.maximum(h + be_ref[...], 0.0)          # f32 epilogue (v5e-safe)

    # --- decoder: Linear + Sigmoid ---
    y = jnp.dot(h.astype(jnp.bfloat16), wd_ref[...],
                preferred_element_type=jnp.float32)
    y = y + bd_ref[...]
    # sigmoid = 1 / (1 + exp(-y)); exp + approx reciprocal both live on the EUP.
    y = pl.reciprocal(1.0 + jnp.exp(-y), approx=True)

    o_ref[...] = y.astype(o_ref.dtype)


@functools.partial(jax.jit, static_argnames=("tile_n",))
def ae_forward(x_nchw, w_enc, b_enc, w_dec, b_dec, *, tile_n=None):
    """Full AE forward: NCHW -> flatten -> encode -> decode -> NCHW."""
    n, c, h, w = x_nchw.shape
    d = c * h * w
    bneck = w_enc.shape[1]
    x_flat = x_nchw.reshape(n, d)                  # glue: flatten to (N, D)

    # Batch tile: multiple of 8 sublanes, capped at 128 rows (MXU height).
    if tile_n is None:
        tile_n = min(128, _round_up(max(n, 1), 8))
    n_pad = _round_up(n, tile_n)
    if n_pad != n:
        x_flat = jnp.pad(x_flat, ((0, n_pad - n), (0, 0)))
    grid = (n_pad // tile_n,)

    be = b_enc.astype(jnp.float32).reshape(1, bneck)
    bd = b_dec.astype(jnp.float32).reshape(1, d)

    act_bytes = jnp.dtype(x_flat.dtype).itemsize
    w_bytes = jnp.dtype(w_enc.dtype).itemsize
    # Explicit VMEM budget: resident weights/biases + double-buffered in/out
    # activation tiles + f32 intermediates, with 1.5x slack.
    vmem_needed = (
        2 * d * bneck * w_bytes                    # encoder + decoder weights
        + (bneck + d) * 4                          # biases (f32)
        + 2 * 2 * tile_n * d * act_bytes           # dbl-buffered in + out tiles
        + tile_n * (bneck + 2 * d) * 4             # f32 intermediates
    )
    vmem_limit = min(max(int(1.5 * vmem_needed) + (4 << 20), 8 << 20), 48 << 20)

    out_flat = pl.pallas_call(
        ae_kernel,
        out_shape=jax.ShapeDtypeStruct((n_pad, d), x_flat.dtype),
        grid=grid,
        in_specs=[
            pl.BlockSpec((tile_n, d), lambda i: (i, 0)),     # activations: tiled
            pl.BlockSpec((d, bneck), lambda i: (0, 0)),      # enc weight: resident
            pl.BlockSpec((1, bneck), lambda i: (0, 0)),      # enc bias:   resident
            pl.BlockSpec((bneck, d), lambda i: (0, 0)),      # dec weight: resident
            pl.BlockSpec((1, d), lambda i: (0, 0)),          # dec bias:   resident
        ],
        out_specs=pl.BlockSpec((tile_n, d), lambda i: (i, 0)),
        compiler_params=pltpu.CompilerParams(
            dimension_semantics=("parallel",),               # megacore on v7x
            vmem_limit_bytes=vmem_limit,
        ),
    )(x_flat, w_enc, be, w_dec, bd)

    return out_flat[:n].reshape(n, c, h, w)        # glue: drop pad, back to NCHW


def init_params(in_dim, bottleneck, w_dtype=jnp.bfloat16):
    """Deterministic parameter init (Glorot-ish scaling); weights in bf16."""
    k = jax.random.PRNGKey(42)
    k_we, k_wd = jax.random.split(k)
    scale_e = 1.0 / jnp.sqrt(jnp.float32(in_dim))
    scale_d = 1.0 / jnp.sqrt(jnp.float32(bottleneck))
    w_enc = (jax.random.normal(k_we, (in_dim, bottleneck), jnp.float32) * scale_e).astype(w_dtype)
    b_enc = jnp.zeros((bottleneck,), jnp.float32)
    w_dec = (jax.random.normal(k_wd, (bottleneck, in_dim), jnp.float32) * scale_d).astype(w_dtype)
    b_dec = jnp.zeros((in_dim,), jnp.float32)
    return w_enc, b_enc, w_dec, b_dec


if __name__ == "__main__":
    # Small shapes consistent with the module: NCHW image batch, flattened dim
    # 4*16*16 = 1024 features; bottleneck kept lane-aligned at 256.
    N, C, H, W = 2, 4, 16, 16
    IN_DIM = C * H * W          # 1024
    BOTTLENECK = 256

    key = jax.random.PRNGKey(0)
    x = jax.random.normal(key, (N, C, H, W), jnp.float32)

    w_enc, b_enc, w_dec, b_dec = init_params(IN_DIM, BOTTLENECK)

    y = ae_forward(x, w_enc, b_enc, w_dec, b_dec)
    y = jax.block_until_ready(y)

    # Sanity check against a pure-JAX f32 reference (same bf16 weights).
    we_f32 = w_enc.astype(jnp.float32)
    wd_f32 = w_dec.astype(jnp.float32)
    ref_h = jnp.maximum(x.reshape(N, IN_DIM) @ we_f32 + b_enc, 0.0)
    ref_y = jax.nn.sigmoid(ref_h @ wd_f32 + b_dec).reshape(N, C, H, W)
    assert y.shape == x.shape and y.dtype == x.dtype
    # bf16 MXU inputs + approx reciprocal -> loosen tolerance vs. full-f32 ref.
    assert jnp.allclose(y, ref_y, atol=2e-2, rtol=2e-2)

    # TODO(synk): encoder/decoder are constructor-injected in the PyTorch spec;
    # this kernel implements the canonical Linear+ReLU / Linear+Sigmoid pair.
    print("KERNEL_OK")
</pallas_src>

<mosaic_0001>
module attributes {stable_mosaic.version = 11 : i64} {
  func.func @ae_kernel(%arg0: i32, %arg1: memref<8x1024xf32, #tpu.memory_space<vmem>>, %arg2: memref<1024x256xbf16, #tpu.memory_space<vmem>>, %arg3: memref<1x256xf32, #tpu.memory_space<vmem>>, %arg4: memref<256x1024xbf16, #tpu.memory_space<vmem>>, %arg5: memref<1x1024xf32, #tpu.memory_space<vmem>>, %arg6: memref<8x1024xf32, #tpu.memory_space<vmem>>) attributes {dimension_semantics = [#tpu.dimension_semantics<parallel>], iteration_bounds = array<i64: 1>, scalar_prefetch = 0 : i64, scratch_operands = 0 : i64, tpu.core_type = #tpu.core_type<tc>, window_params = [{transform_indices = @transform_0, window_bounds = array<i64: 8, 1024>}, {pipeline_mode = #tpu.pipeline_mode<synchronous>, transform_indices = @transform_1, window_bounds = array<i64: 1024, 256>}, {pipeline_mode = #tpu.pipeline_mode<synchronous>, transform_indices = @transform_2, window_bounds = array<i64: 1, 256>}, {pipeline_mode = #tpu.pipeline_mode<synchronous>, transform_indices = @transform_3, window_bounds = array<i64: 256, 1024>}, {pipeline_mode = #tpu.pipeline_mode<synchronous>, transform_indices = @transform_4, window_bounds = array<i64: 1, 1024>}, {transform_indices = @transform_5, window_bounds = array<i64: 8, 1024>}]} {
    %c0 = arith.constant 0 : index
    %c0_0 = arith.constant 0 : index
    %0 = vector.load %arg1[%c0, %c0_0] : memref<8x1024xf32, #tpu.memory_space<vmem>>, vector<8x1024xf32>
    %1 = arith.truncf %0 : vector<8x1024xf32> to vector<8x1024xbf16>
    %c0_1 = arith.constant 0 : index
    %c0_2 = arith.constant 0 : index
    %2 = vector.load %arg2[%c0_1, %c0_2] : memref<1024x256xbf16, #tpu.memory_space<vmem>>, vector<1024x256xbf16>
    %cst = arith.constant dense<0.000000e+00> : vector<8x256xf32>
    %3 = tpu.matmul %1, %2, %cst {dimension_numbers = #tpu.dot_dimension_numbers<[1], [0], [0], [1], [0, 0, 1, 1], [], []>} : vector<8x1024xbf16>, vector<1024x256xbf16>, vector<8x256xf32> -> vector<8x256xf32>
    %c0_3 = arith.constant 0 : index
    %c0_4 = arith.constant 0 : index
    %4 = vector.load %arg3[%c0_3, %c0_4] : memref<1x256xf32, #tpu.memory_space<vmem>>, vector<1x256xf32>
    %5 = vector.broadcast %4 : vector<1x256xf32> to vector<8x256xf32>
    %6 = arith.addf %3, %5 : vector<8x256xf32>
    %cst_5 = arith.constant 0.000000e+00 : f32
    %7 = vector.broadcast %cst_5 : f32 to vector<8x256xf32>
    %8 = arith.maximumf %6, %7 : vector<8x256xf32>
    %9 = arith.truncf %8 : vector<8x256xf32> to vector<8x256xbf16>
    %c0_6 = arith.constant 0 : index
    %c0_7 = arith.constant 0 : index
    %10 = vector.load %arg4[%c0_6, %c0_7] : memref<256x1024xbf16, #tpu.memory_space<vmem>>, vector<256x1024xbf16>
    %cst_8 = arith.constant dense<0.000000e+00> : vector<8x1024xf32>
    %11 = tpu.matmul %9, %10, %cst_8 {dimension_numbers = #tpu.dot_dimension_numbers<[1], [0], [0], [1], [0, 0, 1, 1], [], []>} : vector<8x256xbf16>, vector<256x1024xbf16>, vector<8x1024xf32> -> vector<8x1024xf32>
    %c0_9 = arith.constant 0 : index
    %c0_10 = arith.constant 0 : index
    %12 = vector.load %arg5[%c0_9, %c0_10] : memref<1x1024xf32, #tpu.memory_space<vmem>>, vector<1x1024xf32>
    %13 = vector.broadcast %12 : vector<1x1024xf32> to vector<8x1024xf32>
    %14 = arith.addf %11, %13 : vector<8x1024xf32>
    %cst_11 = arith.constant 0.000000e+00 : f32
    %15 = vector.broadcast %cst_11 : f32 to vector<8x1024xf32>
    %16 = arith.subf %15, %14 : vector<8x1024xf32>
    %17 = math.exp %16 : vector<8x1024xf32>
    %cst_12 = arith.constant 1.000000e+00 : f32
    %18 = vector.broadcast %cst_12 : f32 to vector<8x1024xf32>
    %19 = arith.addf %18, %17 : vector<8x1024xf32>
    %20 = tpu.reciprocal %19 {approx = true} : vector<8x1024xf32> -> vector<8x1024xf32>
    %c0_13 = arith.constant 0 : index
    %c0_14 = arith.constant 0 : index
    %21 = vector.load %arg6[%c0_13, %c0_14] : memref<8x1024xf32, #tpu.memory_space<vmem>>, vector<8x1024xf32>
    tpu.vector_store %arg6[%c0_13, %c0_14], %20 {strides = array<i32>} : memref<8x1024xf32, #tpu.memory_space<vmem>>, vector<8x1024xf32>,
    return
  }
  func.func @transform_0(%arg0: i32) -> (i32, i32) {
    %c0_i32 = arith.constant 0 : i32
    %c0_i32_0 = arith.constant 0 : i32
    return %arg0, %c0_i32 : i32, i32
  }
  func.func @transform_1(%arg0: i32) -> (i32, i32) {
    %c0_i32 = arith.constant 0 : i32
    %c0_i32_0 = arith.constant 0 : i32
    %c0_i32_1 = arith.constant 0 : i32
    return %c0_i32, %c0_i32_0 : i32, i32
  }
  func.func @transform_2(%arg0: i32) -> (i32, i32) {
    %c0_i32 = arith.constant 0 : i32
    %c0_i32_0 = arith.constant 0 : i32
    %c0_i32_1 = arith.constant 0 : i32
    return %c0_i32, %c0_i32_0 : i32, i32
  }
  func.func @transform_3(%arg0: i32) -> (i32, i32) {
    %c0_i32 = arith.constant 0 : i32
    %c0_i32_0 = arith.constant 0 : i32
    %c0_i32_1 = arith.constant 0 : i32
    return %c0_i32, %c0_i32_0 : i32, i32
  }
  func.func @transform_4(%arg0: i32) -> (i32, i32) {
    %c0_i32 = arith.constant 0 : i32
    %c0_i32_0 = arith.constant 0 : i32
    %c0_i32_1 = arith.constant 0 : i32
    return %c0_i32, %c0_i32_0 : i32, i32
  }
  func.func @transform_5(%arg0: i32) -> (i32, i32) {
    %c0_i32 = arith.constant 0 : i32
    %c0_i32_0 = arith.constant 0 : i32
    return %arg0, %c0_i32 : i32, i32
  }
}

</mosaic_0001>

<bundles_post_ra>
// kernel: ae_forward.1
= control target key start
LH: loop header
LB: loop body
LE: loop exit
PB: predicated region body
PF: predicated region fallthrough
CT: control target
= control target key end

     0   :  { %10 = vsyncpa [#allocation3], 0  ;;  %s3652_s0 = inlined_call_operand.vmem [shape: f32[8,1024], index: 0, kind: input, shape index: {}]   ;;  %s3653_s1 = inlined_call_operand.hbm [shape: bf16[1024,256], index: 1, kind: input, shape index: {}]   ;;  %s3654_s2 = inlined_call_operand.vmem [shape: f32[1,256], index: 2, kind: input, shape index: {}]   ;;  %s3655_s3 = inlined_call_operand.hbm [shape: bf16[256,1024], index: 3, kind: input, shape index: {}]   ;;  %s3656_s4 = inlined_call_operand.vmem [shape: f32[1,1024], index: 4, kind: input, shape index: {}]   ;;  %s3657_s5 = inlined_call_operand.vmem [shape: f32[8,1024], index: 5, kind: output, shape index: {}]  }
   0x1   :  { %s18_s20 = sshll.u32 %s3653_s1, 4  ;;  %s19_s20 = int_to_ptr.hbm [resolvable:$true] %s18_s20 }
   0x2   :  { %11 = vsyncpa [#allocation5], 0  ;;  %s3472_s21 = smov [#allocation2]   ;;  %s33_s25 = sshll.u32 %s3655_s3, 4  ;;  %s34_s25 = int_to_ptr.hbm [resolvable:$true] %s33_s25 }
   0x3   :  { %s20_s22 = sshll.u32 %s3472_s21, 4  ;;  %s3473_s26 = smov 128   ;;  %s21_s22 = int_to_ptr.vmem [resolvable:$true] %s20_s22 }
   0x4   :  { %s3474_s27 = smov 8   ;;  %s3475_s28 = smov [#allocation4]  }
   0x5   :  { %26 = dma.hbm_to_vmem [thread:$0]  %s19_s20, 16384, %s21_s22, [#allocation3], %s3473_s26, %s3473_s26, %s3474_s27  }
   0x6   :  { %s35_s29 = sshll.u32 %s3475_s28, 4  ;;  %s3476_s30 = smov 512   ;;  %s36_s29 = int_to_ptr.vmem [resolvable:$true] %s35_s29 }
   0x7   :  { %s3477_s6 = smov 32  }
   0x8   :  { %41 = dma.hbm_to_vmem [thread:$0]  %s34_s25, 16384, %s36_s29, [#allocation5], %s3476_s30, %s3476_s30, %s3477_s6  }
   0x9   :  { %3468 = dma.done.wait [#allocation3], 16384  }
   0xa   :  { %3469 = vsyncadd [#allocation3], 4294950912 }
   0xb   :  { %3470 = dma.done.wait [#allocation5], 16384  }
   0xc   :  { %3471 = vsyncadd [#allocation5], 4294950912  ;;  %v2160_v0 = vld [vmem:[#allocation2 + $0x70] sm:$0xf]  ;;  %v3141_v1 = vld [vmem:[#allocation2 + $0x74] sm:$0xf0] }
   0xd   :  { %v2224_v2 = vld [vmem:[#allocation2 + $0xf0] sm:$0xf]  ;;  %v2161_v3 = vor.u32 %v3141_v1, %v2160_v0  ;;  %v3157_v4 = vld [vmem:[#allocation2 + $0xf4] sm:$0xf0]  ;;  %v2152_v11 = vld [vmem:[#allocation2 + $0x60] sm:$0xf] }
   0xe   :  { %v2288_v5 = vld [vmem:[#allocation2 + $0x170] sm:$0xf]  ;;  %v3173_v6 = vld [vmem:[#allocation2 + $0x174] sm:$0xf0]  ;;  %v2225_v7 = vor.u32 %v3157_v4, %v2224_v2  ;;  %v3139_v13 = vld [vmem:[#allocation2 + $0x64] sm:$0xf0] }
   0xf   :  { %v2289_v8 = vor.u32 %v3173_v6, %v2288_v5  ;;  %v2352_v9 = vld [vmem:[#allocation2 + $0x1f0] sm:$0xf]  ;;  %v3189_v10 = vld [vmem:[#allocation2 + $0x1f4] sm:$0xf0]  ;;  %842 = vmatpush.bf16.msra.mxu0 %v2161_v3  ;;  %v2216_v14 = vld [vmem:[#allocation2 + $0xe0] sm:$0xf]  ;;  %v2153_v16 = vor.u32 %v3139_v13, %v2152_v11 }
  0x10   :  { %v2353_v12 = vor.u32 %v3189_v10, %v2352_v9  ;;  %v3155_v15 = vld [vmem:[#allocation2 + $0xe4] sm:$0xf0]  ;;  %855 = vmatpush.bf16.msra.mxu1 %v2225_v7  ;;  %v2280_v18 = vld [vmem:[#allocation2 + $0x160] sm:$0xf]  ;;  %v2144_v23 = vld [vmem:[#allocation2 + $0x50] sm:$0xf] }
  0x11   :  { %868 = vmatpush.bf16.msra.mxu2 %v2289_v8  ;;  %v2217_v17 = vor.u32 %v3155_v15, %v2216_v14  ;;  %v3171_v19 = vld [vmem:[#allocation2 + $0x164] sm:$0xf0]  ;;  %v2344_v20 = vld [vmem:[#allocation2 + $0x1e0] sm:$0xf]  ;;  %v3137_v24 = vld [vmem:[#allocation2 + $0x54] sm:$0xf0] }
  0x12   :  { %881 = vmatpush.bf16.msra.mxu3 %v2353_v12  ;;  %v2281_v21 = vor.u32 %v3171_v19, %v2280_v18  ;;  %v3187_v22 = vld [vmem:[#allocation2 + $0x1e4] sm:$0xf0]  ;;  %v2208_v26 = vld [vmem:[#allocation2 + $0xd0] sm:$0xf]  ;;  %v3153_v27 = vld [vmem:[#allocation2 + $0xd4] sm:$0xf0]  ;;  %v2145_v29 = vor.u32 %v3137_v24, %v2144_v23 }
  0x13   :  { %v2345_v25 = vor.u32 %v3187_v22, %v2344_v20  ;;  %v2272_v28 = vld [vmem:[#allocation2 + $0x150] sm:$0xf]  ;;  %843 = vmatpush.bf16.msra.mxu0 %v2153_v16  ;;  %v3169_v30 = vld [vmem:[#allocation2 + $0x154] sm:$0xf0]  ;;  %v2209_v33 = vor.u32 %v3153_v27, %v2208_v26  ;;  %v2136_v35 = vld [vmem:[#allocation2 + $0x40] sm:$0xf] }
  0x14   :  { %v2336_v31 = vld [vmem:[#allocation2 + $0x1d0] sm:$0xf]  ;;  %v3185_v32 = vld [vmem:[#allocation2 + $0x1d4] sm:$0xf0]  ;;  %856 = vmatpush.bf16.msra.mxu1 %v2217_v17  ;;  %v2273_v34 = vor.u32 %v3169_v30, %v2272_v28  ;;  %v3135_v36 = vld [vmem:[#allocation2 + $0x44] sm:$0xf0] }
  0x15   :  { %869 = vmatpush.bf16.msra.mxu2 %v2281_v21  ;;  %v2200_v37 = vld [vmem:[#allocation2 + $0xc0] sm:$0xf]  ;;  %v2337_v38 = vor.u32 %v3185_v32, %v2336_v31  ;;  %v3151_v39 = vld [vmem:[#allocation2 + $0xc4] sm:$0xf0]  ;;  %v2137_v44 = vor.u32 %v3135_v36, %v2136_v35  ;;  %v2128_v47 = vld [vmem:[#allocation2 + $0x30] sm:$0xf] }
  0x16   :  { %882 = vmatpush.bf16.msra.mxu3 %v2345_v25  ;;  %v2264_v40 = vld [vmem:[#allocation2 + $0x140] sm:$0xf]  ;;  %v3167_v41 = vld [vmem:[#allocation2 + $0x144] sm:$0xf0]  ;;  %v2201_v45 = vor.u32 %v3151_v39, %v2200_v37  ;;  %v3133_v48 = vld [vmem:[#allocation2 + $0x34] sm:$0xf0] }
  0x17   :  { %v2328_v42 = vld [vmem:[#allocation2 + $0x1c0] sm:$0xf]  ;;  %v3183_v43 = vld [vmem:[#allocation2 + $0x1c4] sm:$0xf0]  ;;  %844 = vmatpush.bf16.msra.mxu0 %v2145_v29  ;;  %v2265_v46 = vor.u32 %v3167_v41, %v2264_v40  ;;  %v2192_v49 = vld [vmem:[#allocation2 + $0xb0] sm:$0xf]  ;;  %v2129_v56 = vor.u32 %v3133_v48, %v2128_v47 }
  0x18   :  { %857 = vmatpush.bf16.msra.mxu1 %v2209_v33  ;;  %v2329_v50 = vor.u32 %v3183_v43, %v2328_v42  ;;  %v3149_v51 = vld [vmem:[#allocation2 + $0xb4] sm:$0xf0]  ;;  %v2256_v52 = vld [vmem:[#allocation2 + $0x130] sm:$0xf]  ;;  %v2120_v59 = vld [vmem:[#allocation2 + $0x20] sm:$0xf] }
  0x19   :  { %870 = vmatpush.bf16.msra.mxu2 %v2273_v34  ;;  %v3165_v53 = vld [vmem:[#allocation2 + $0x134] sm:$0xf0]  ;;  %v2320_v54 = vld [vmem:[#allocation2 + $0x1b0] sm:$0xf]  ;;  %v2193_v57 = vor.u32 %v3149_v51, %v2192_v49  ;;  %v3131_v60 = vld [vmem:[#allocation2 + $0x24] sm:$0xf0] }
  0x1a   :  { %883 = vmatpush.bf16.msra.mxu3 %v2337_v38  ;;  %v3181_v55 = vld [vmem:[#allocation2 + $0x1b4] sm:$0xf0]  ;;  %v2257_v58 = vor.u32 %v3165_v53, %v2256_v52  ;;  %v2184_v61 = vld [vmem:[#allocation2 + $0xa0] sm:$0xf]  ;;  %v3147_v63 = vld [vmem:[#allocation2 + $0xa4] sm:$0xf0]  ;;  %v2121_v4 = vor.u32 %v3131_v60, %v2120_v59 }
  0x1b   :  { %845 = vmatpush.bf16.msra.mxu0 %v2137_v44  ;;  %v2321_v62 = vor.u32 %v3181_v55, %v2320_v54  ;;  %v2248_v0 = vld [vmem:[#allocation2 + $0x120] sm:$0xf]  ;;  %v3163_v1 = vld [vmem:[#allocation2 + $0x124] sm:$0xf0]  ;;  %v2185_v5 = vor.u32 %v3147_v63, %v2184_v61  ;;  %v2112_v7 = vld [vmem:[#allocation2 + $0x10] sm:$0xf] }
  0x1c   :  { %858 = vmatpush.bf16.msra.mxu1 %v2201_v45  ;;  %v2312_v2 = vld [vmem:[#allocation2 + $0x1a0] sm:$0xf]  ;;  %v3179_v3 = vld [vmem:[#allocation2 + $0x1a4] sm:$0xf0]  ;;  %v2249_v6 = vor.u32 %v3163_v1, %v2248_v0  ;;  %v3129_v8 = vld [vmem:[#allocation2 + $0x14] sm:$0xf0] }
  0x1d   :  { %871 = vmatpush.bf16.msra.mxu2 %v2265_v46  ;;  %v2176_v9 = vld [vmem:[#allocation2 + $0x90] sm:$0xf]  ;;  %v2313_v10 = vor.u32 %v3179_v3, %v2312_v2  ;;  %v3145_v11 = vld [vmem:[#allocation2 + $0x94] sm:$0xf0]  ;;  %v2113_v16 = vor.u32 %v3129_v8, %v2112_v7  ;;  %v2104_v17 = vld [vmem:[#allocation2] sm:$0xf] }
  0x1e   :  { %884 = vmatpush.bf16.msra.mxu3 %v2329_v50  ;;  %v2240_v12 = vld [vmem:[#allocation2 + $0x110] sm:$0xf]  ;;  %v3161_v13 = vld [vmem:[#allocation2 + $0x114] sm:$0xf0]  ;;  %v3127_v18 = vld [vmem:[#allocation2 + $0x4] sm:$0xf0]  ;;  %v2177_v19 = vor.u32 %v3145_v11, %v2176_v9 }
  0x1f   :  { %846 = vmatpush.bf16.msra.mxu0 %v2129_v56  ;;  %v2304_v14 = vld [vmem:[#allocation2 + $0x190] sm:$0xf]  ;;  %v3177_v15 = vld [vmem:[#allocation2 + $0x194] sm:$0xf0]  ;;  %v2241_v20 = vor.u32 %v3161_v13, %v2240_v12  ;;  %v2168_v21 = vld [vmem:[#allocation2 + $0x80] sm:$0xf]  ;;  %v2105_v31 = vor.u32 %v3127_v18, %v2104_v17 }
  0x20   :  { %859 = vmatpush.bf16.msra.mxu1 %v2193_v57  ;;  %v3143_v22 = vld [vmem:[#allocation2 + $0x84] sm:$0xf0]  ;;  %v2232_v23 = vld [vmem:[#allocation2 + $0x100] sm:$0xf]  ;;  %v2305_v24 = vor.u32 %v3177_v15, %v2304_v14  ;;  %v2416_v28 = vld [vmem:[#allocation2 + $0x270] sm:$0xf] }
  0x21   :  { %872 = vmatpush.bf16.msra.mxu2 %v2257_v58  ;;  %v3159_v25 = vld [vmem:[#allocation2 + $0x104] sm:$0xf0]  ;;  %v2296_v26 = vld [vmem:[#allocation2 + $0x180] sm:$0xf]  ;;  %v3205_v29 = vld [vmem:[#allocation2 + $0x274] sm:$0xf0]  ;;  %v2169_v35 = vor.u32 %v3143_v22, %v2168_v21 }
  0x22   :  { %885 = vmatpush.bf16.msra.mxu3 %v2321_v62  ;;  %v3175_v27 = vld [vmem:[#allocation2 + $0x184] sm:$0xf0]  ;;  %v2480_v30 = vld [vmem:[#allocation2 + $0x2f0] sm:$0xf]  ;;  %v3221_v32 = vld [vmem:[#allocation2 + $0x2f4] sm:$0xf0]  ;;  %v2233_v36 = vor.u32 %v3159_v25, %v2232_v23  ;;  %v2417_v40 = vor.u32 %v3205_v29, %v2416_v28 }
  0x23   :  { %847 = vmatpush.bf16.msra.mxu0 %v2121_v4  ;;  %v2544_v33 = vld [vmem:[#allocation2 + $0x370] sm:$0xf]  ;;  %v3237_v34 = vld [vmem:[#allocation2 + $0x374] sm:$0xf0]  ;;  %v2297_v39 = vor.u32 %v3175_v27, %v2296_v26  ;;  %v2481_v41 = vor.u32 %v3221_v32, %v2480_v30  ;;  %v2408_v43 = vld [vmem:[#allocation2 + $0x260] sm:$0xf] }
  0x24   :  { %860 = vmatpush.bf16.msra.mxu1 %v2185_v5  ;;  %v2608_v37 = vld [vmem:[#allocation2 + $0x3f0] sm:$0xf]  ;;  %v3253_v38 = vld [vmem:[#allocation2 + $0x3f4] sm:$0xf0]  ;;  %v2545_v42 = vor.u32 %v3237_v34, %v2544_v33  ;;  %v3203_v44 = vld [vmem:[#allocation2 + $0x264] sm:$0xf0] }
  0x25   :  { %873 = vmatpush.bf16.msra.mxu2 %v2249_v6  ;;  %v2472_v45 = vld [vmem:[#allocation2 + $0x2e0] sm:$0xf]  ;;  %v2609_v46 = vor.u32 %v3253_v38, %v2608_v37  ;;  %v3219_v47 = vld [vmem:[#allocation2 + $0x2e4] sm:$0xf0]  ;;  %v54_v52 = vld [vmem:[%s3652_s0 + $0x10] sm:$0xff]  ;;  %v2409_v53 = vor.u32 %v3203_v44, %v2408_v43 }
  0x26   :  { %886 = vmatpush.bf16.msra.mxu3 %v2313_v10  ;;  %v2536_v48 = vld [vmem:[#allocation2 + $0x360] sm:$0xf]  ;;  %v3235_v49 = vld [vmem:[#allocation2 + $0x364] sm:$0xf0]  ;;  %v2400_v54 = vld [vmem:[#allocation2 + $0x250] sm:$0xf]  ;;  %v3517_v57 = vpack.c.bf16 %v54_v52, %v54_v52  ;;  %v2473_v58 = vor.u32 %v3219_v47, %v2472_v45 }
  0x27   :  { %848 = vmatpush.bf16.msra.mxu0 %v2113_v16  ;;  %v2600_v50 = vld [vmem:[#allocation2 + $0x3e0] sm:$0xf]  ;;  %v3251_v51 = vld [vmem:[#allocation2 + $0x3e4] sm:$0xf0]  ;;  %v3201_v55 = vld [vmem:[#allocation2 + $0x254] sm:$0xf0]  ;;  %v2537_v59 = vor.u32 %v3235_v49, %v2536_v48 }
  0x28   :  { %861 = vmatpush.bf16.msra.mxu1 %v2177_v19  ;;  %v2464_v56 = vld [vmem:[#allocation2 + $0x2d0] sm:$0xf]  ;;  %v3217_v60 = vld [vmem:[#allocation2 + $0x2d4] sm:$0xf0]  ;;  %v2601_v63 = vor.u32 %v3251_v51, %v2600_v50  ;;  %v52_v0 = vld [vmem:[%s3652_s0] sm:$0xff]  ;;  %v2401_v8 = vor.u32 %v3201_v55, %v2400_v54 }
  0x29   :  { %874 = vmatpush.bf16.msra.mxu2 %v2241_v20  ;;  %v2528_v61 = vld [vmem:[#allocation2 + $0x350] sm:$0xf]  ;;  %v3233_v62 = vld [vmem:[#allocation2 + $0x354] sm:$0xf0]  ;;  %v53_v2 = vld [vmem:[%s3652_s0 + $0x8] sm:$0xff]  ;;  %v3529_v5 = vpack.c.bf16 %v52_v0, %v52_v0  ;;  %v2465_v9 = vor.u32 %v3217_v60, %v2464_v56 }
  0x2a   :  { %887 = vmatpush.bf16.msra.mxu3 %v2305_v24  ;;  %v55_v1 = vld [vmem:[%s3652_s0 + $0x18] sm:$0xff]  ;;  %v2592_v3 = vld [vmem:[#allocation2 + $0x3d0] sm:$0xf]  ;;  %v3533_v7 = vpack.c.bf16 %v53_v2, %v53_v2  ;;  %v2529_v10 = vor.u32 %v3233_v62, %v2528_v61  ;;  %v2392_v11 = vld [vmem:[#allocation2 + $0x240] sm:$0xf] }
  0x2b   :  { %849 = vmatpush.bf16.msra.mxu0 %v2105_v31  ;;  %v3249_v4 = vld [vmem:[#allocation2 + $0x3d4] sm:$0xf0]  ;;  %v3531_v6 = vpack.c.bf16 %v55_v1, %v55_v1  ;;  %v3199_v12 = vld [vmem:[#allocation2 + $0x244] sm:$0xf0]  ;;  %v2456_v13 = vld [vmem:[#allocation2 + $0x2c0] sm:$0xf] }
  0x2c   :  { %862 = vmatpush.bf16.msra.mxu1 %v2169_v35  ;;  %v2593_v14 = vor.u32 %v3249_v4, %v2592_v3  ;;  %v3215_v15 = vld [vmem:[#allocation2 + $0x2c4] sm:$0xf0]  ;;  %v2520_v16 = vld [vmem:[#allocation2 + $0x340] sm:$0xf]  ;;  %v2393_v20 = vor.u32 %v3199_v12, %v2392_v11  ;;  %v2384_v23 = vld [vmem:[#allocation2 + $0x230] sm:$0xf] }
  0x2d   :  { %875 = vmatpush.bf16.msra.mxu2 %v2233_v36  ;;  %v3231_v17 = vld [vmem:[#allocation2 + $0x344] sm:$0xf0]  ;;  %v2584_v18 = vld [vmem:[#allocation2 + $0x3c0] sm:$0xf]  ;;  %v2457_v21 = vor.u32 %v3215_v15, %v2456_v13  ;;  %v3197_v24 = vld [vmem:[#allocation2 + $0x234] sm:$0xf0] }
  0x2e   :  { %888 = vmatpush.bf16.msra.mxu3 %v2297_v39  ;;  %850 = vmatmul.bf16.vlgmr.msra.gmra.mxu0 %v3529_v5  ;;  %v3247_v19 = vld [vmem:[#allocation2 + $0x3c4] sm:$0xf0]  ;;  %v2521_v22 = vor.u32 %v3231_v17, %v2520_v16  ;;  %v2448_v25 = vld [vmem:[#allocation2 + $0x2b0] sm:$0xf]  ;;  %v3213_v27 = vld [vmem:[#allocation2 + $0x2b4] sm:$0xf0]  ;;  %v2385_v32 = vor.u32 %v3197_v24, %v2384_v23 }
  0x2f   :  { %894 = vmatpush.bf16.msrb.mxu0 %v2417_v40  ;;  %863 = vmatmul.bf16.vlgmr.msra.gmra.mxu1 %v3533_v7  ;;  %v2585_v26 = vor.u32 %v3247_v19, %v2584_v18  ;;  %v2512_v28 = vld [vmem:[#allocation2 + $0x330] sm:$0xf]  ;;  %v3229_v29 = vld [vmem:[#allocation2 + $0x334] sm:$0xf0]  ;;  %v2449_v33 = vor.u32 %v3213_v27, %v2448_v25  ;;  %v2376_v35 = vld [vmem:[#allocation2 + $0x220] sm:$0xf] }
  0x30   :  { %907 = vmatpush.bf16.msrb.mxu1 %v2481_v41  ;;  %876 = vmatmul.bf16.vlgmr.msra.gmra.mxu2 %v3517_v57  ;;  %v2576_v30 = vld [vmem:[#allocation2 + $0x3b0] sm:$0xf]  ;;  %v3245_v31 = vld [vmem:[#allocation2 + $0x3b4] sm:$0xf0]  ;;  %v2513_v34 = vor.u32 %v3229_v29, %v2512_v28  ;;  %v3195_v36 = vld [vmem:[#allocation2 + $0x224] sm:$0xf0] }
  0x31   :  { %920 = vmatpush.bf16.msrb.mxu2 %v2545_v42  ;;  %889 = vmatmul.bf16.vlgmr.msra.gmra.mxu3 %v3531_v6  ;;  %v2440_v37 = vld [vmem:[#allocation2 + $0x2a0] sm:$0xf]  ;;  %v2577_v38 = vor.u32 %v3245_v31, %v2576_v30  ;;  %v3211_v39 = vld [vmem:[#allocation2 + $0x2a4] sm:$0xf0]  ;;  %v2377_v44 = vor.u32 %v3195_v36, %v2376_v35  ;;  %v2368_v47 = vld [vmem:[#allocation2 + $0x210] sm:$0xf] }
  0x32   :  { %933 = vmatpush.bf16.msrb.mxu3 %v2609_v46  ;;  %v2504_v40 = vld [vmem:[#allocation2 + $0x320] sm:$0xf]  ;;  %v3227_v41 = vld [vmem:[#allocation2 + $0x324] sm:$0xf0]  ;;  %v2441_v45 = vor.u32 %v3211_v39, %v2440_v37  ;;  %v3193_v48 = vld [vmem:[#allocation2 + $0x214] sm:$0xf0] }
  0x33   :  { %895 = vmatpush.bf16.msrb.mxu0 %v2409_v53  ;;  %v2568_v42 = vld [vmem:[#allocation2 + $0x3a0] sm:$0xf]  ;;  %v3243_v43 = vld [vmem:[#allocation2 + $0x3a4] sm:$0xf0]  ;;  %v2505_v46 = vor.u32 %v3227_v41, %v2504_v40  ;;  %v2432_v49 = vld [vmem:[#allocation2 + $0x290] sm:$0xf]  ;;  %v2369_v56 = vor.u32 %v3193_v48, %v2368_v47 }
  0x34   :  { %908 = vmatpush.bf16.msrb.mxu1 %v2473_v58  ;;  %v2569_v50 = vor.u32 %v3243_v43, %v2568_v42  ;;  %v3209_v51 = vld [vmem:[#allocation2 + $0x294] sm:$0xf0]  ;;  %v2496_v52 = vld [vmem:[#allocation2 + $0x310] sm:$0xf]  ;;  %v2360_v58 = vld [vmem:[#allocation2 + $0x200] sm:$0xf] }
  0x35   :  { %921 = vmatpush.bf16.msrb.mxu2 %v2537_v59  ;;  %v3225_v53 = vld [vmem:[#allocation2 + $0x314] sm:$0xf0]  ;;  %v2560_v54 = vld [vmem:[#allocation2 + $0x390] sm:$0xf]  ;;  %v3191_v59 = vld [vmem:[#allocation2 + $0x204] sm:$0xf0]  ;;  %v2433_v60 = vor.u32 %v3209_v51, %v2432_v49 }
  0x36   :  { %934 = vmatpush.bf16.msrb.mxu3 %v2601_v63  ;;  %v3241_v55 = vld [vmem:[#allocation2 + $0x394] sm:$0xf0]  ;;  %v2497_v61 = vor.u32 %v3225_v53, %v2496_v52  ;;  %v2424_v62 = vld [vmem:[#allocation2 + $0x280] sm:$0xf]  ;;  %v3207_v63 = vld [vmem:[#allocation2 + $0x284] sm:$0xf0]  ;;  %v2361_v11 = vor.u32 %v3191_v59, %v2360_v58 }
  0x37   :  { %896 = vmatpush.bf16.msrb.mxu0 %v2401_v8  ;;  %v2488_v0 = vld [vmem:[#allocation2 + $0x300] sm:$0xf]  ;;  %v2561_v1 = vor.u32 %v3241_v55, %v2560_v54  ;;  %v3223_v2 = vld [vmem:[#allocation2 + $0x304] sm:$0xf0]  ;;  %v3140_v8 = vld [vmem:[#allocation2 + $0x74] sm:$0xf]  ;;  %v2425_v15 = vor.u32 %v3207_v63, %v2424_v62 }
  0x38   :  { %909 = vmatpush.bf16.msrb.mxu1 %v2465_v9  ;;  %v2552_v3 = vld [vmem:[#allocation2 + $0x380] sm:$0xf]  ;;  %v3239_v4 = vld [vmem:[#allocation2 + $0x384] sm:$0xf0]  ;;  %v2162_v9 = vld [vmem:[#allocation2 + $0x78] sm:$0xf0]  ;;  %v2489_v16 = vor.u32 %v3223_v2, %v2488_v0 }
  0x39   :  { %922 = vmatpush.bf16.msrb.mxu2 %v2529_v10  ;;  %v3156_v10 = vld [vmem:[#allocation2 + $0xf4] sm:$0xf]  ;;  %v2226_v12 = vld [vmem:[#allocation2 + $0xf8] sm:$0xf0]  ;;  %v3138_v24 = vld [vmem:[#allocation2 + $0x64] sm:$0xf] }
  0x3a   :  { %935 = vmatpush.bf16.msrb.mxu3 %v2593_v14  ;;  %v3172_v13 = vld [vmem:[#allocation2 + $0x174] sm:$0xf]  ;;  %v2290_v14 = vld [vmem:[#allocation2 + $0x178] sm:$0xf0]  ;;  %v2229_v25 = vor.u32 %v3156_v10, %v2226_v12  ;;  %v2154_v27 = vld [vmem:[#allocation2 + $0x68] sm:$0xf0] }
  0x3b   :  { %897 = vmatpush.bf16.msrb.mxu0 %v2393_v20  ;;  %v3188_v17 = vld [vmem:[#allocation2 + $0x1f4] sm:$0xf]  ;;  %v2354_v18 = vld [vmem:[#allocation2 + $0x1f8] sm:$0xf0]  ;;  %v2553_v20 = vor.u32 %v3239_v4, %v2552_v3  ;;  %v3154_v28 = vld [vmem:[#allocation2 + $0xe4] sm:$0xf]  ;;  %v2157_v39 = vor.u32 %v3138_v24, %v2154_v27 }
  0x3c   :  { %910 = vmatpush.bf16.msrb.mxu1 %v2457_v21  ;;  %v58_v19 = vld [vmem:[%s3652_s0 + $0x30] sm:$0xff]  ;;  %v2165_v21 = vor.u32 %v3140_v8, %v2162_v9  ;;  %v59_v23 = vld [vmem:[%s3652_s0 + $0x38] sm:$0xff]  ;;  %v57_v29 = vld [vmem:[%s3652_s0 + $0x28] sm:$0xff]  ;;  %v2357_v30 = vor.u32 %v3188_v17, %v2354_v18 }
  0x3d   :  { %923 = vmatpush.bf16.msrb.mxu2 %v2521_v22  ;;  %v56_v22 = vld [vmem:[%s3652_s0 + $0x20] sm:$0xff]  ;;  %v3550_v31 = vpack.c.bf16 %v58_v19, %v58_v19  ;;  %v3554_v36 = vpack.c.bf16 %v59_v23, %v59_v23  ;;  %v3556_v40 = vpack.c.bf16 %v57_v29, %v57_v29  ;;  %v3136_v43 = vld [vmem:[#allocation2 + $0x54] sm:$0xf]  ;;  %v2210_v47 = vld [vmem:[#allocation2 + $0xd8] sm:$0xf0] }
  0x3e   :  { %936 = vmatpush.bf16.msrb.mxu3 %v2585_v26  ;;  %v2293_v26 = vor.u32 %v3172_v13, %v2290_v14  ;;  %v3552_v35 = vpack.c.bf16 %v56_v22, %v56_v22  ;;  %v3186_v37 = vld [vmem:[#allocation2 + $0x1e4] sm:$0xf]  ;;  %v3168_v48 = vld [vmem:[#allocation2 + $0x154] sm:$0xf]  ;;  %v2274_v49 = vld [vmem:[#allocation2 + $0x158] sm:$0xf0] }
  0x3f   :  { %898 = vmatpush.bf16.msrb.mxu0 %v2385_v32  ;;  %v2218_v32 = vld [vmem:[#allocation2 + $0xe8] sm:$0xf0]  ;;  %v2338_v51 = vld [vmem:[#allocation2 + $0x1d8] sm:$0xf0]  ;;  %v2277_v54 = vor.u32 %v3168_v48, %v2274_v49  ;;  %v3134_v55 = vld [vmem:[#allocation2 + $0x44] sm:$0xf] }
  0x40   :  { %911 = vmatpush.bf16.msrb.mxu1 %v2449_v33  ;;  %v3170_v33 = vld [vmem:[#allocation2 + $0x164] sm:$0xf]  ;;  %v2221_v41 = vor.u32 %v3154_v28, %v2218_v32  ;;  %v2266_v62 = vld [vmem:[#allocation2 + $0x148] sm:$0xf0]  ;;  %v3132_v4 = vld [vmem:[#allocation2 + $0x34] sm:$0xf] }
  0x41   :  { %924 = vmatpush.bf16.msrb.mxu2 %v2513_v34  ;;  %v2282_v34 = vld [vmem:[#allocation2 + $0x168] sm:$0xf0]  ;;  %v3150_v58 = vld [vmem:[#allocation2 + $0xc4] sm:$0xf]  ;;  %v2130_v8 = vld [vmem:[#allocation2 + $0x38] sm:$0xf0] }
  0x42   :  { %937 = vmatpush.bf16.msrb.mxu3 %v2577_v38  ;;  %v2346_v38 = vld [vmem:[#allocation2 + $0x1e8] sm:$0xf0]  ;;  %v2285_v42 = vor.u32 %v3170_v33, %v2282_v34  ;;  %v3182_v63 = vld [vmem:[#allocation2 + $0x1c4] sm:$0xf]  ;;  %v3148_v9 = vld [vmem:[#allocation2 + $0xb4] sm:$0xf] }
  0x43   :  { %899 = vmatpush.bf16.msrb.mxu0 %v2377_v44  ;;  %v2146_v44 = vld [vmem:[#allocation2 + $0x58] sm:$0xf0]  ;;  %v2330_v0 = vld [vmem:[#allocation2 + $0x1c8] sm:$0xf0]  ;;  %v3164_v12 = vld [vmem:[#allocation2 + $0x134] sm:$0xf] }
  0x44   :  { %912 = vmatpush.bf16.msrb.mxu1 %v2441_v45  ;;  %v3152_v45 = vld [vmem:[#allocation2 + $0xd4] sm:$0xf]  ;;  %v2149_v52 = vor.u32 %v3136_v43, %v2146_v44  ;;  %v2333_v10 = vor.u32 %v3182_v63, %v2330_v0  ;;  %v2258_v13 = vld [vmem:[#allocation2 + $0x138] sm:$0xf0]  ;;  %v3130_v19 = vld [vmem:[#allocation2 + $0x24] sm:$0xf] }
  0x45   :  { %925 = vmatpush.bf16.msrb.mxu2 %v2505_v46  ;;  %v2349_v46 = vor.u32 %v3186_v37, %v2346_v38  ;;  %v2213_v53 = vor.u32 %v3152_v45, %v2210_v47  ;;  %v3180_v14 = vld [vmem:[#allocation2 + $0x1b4] sm:$0xf]  ;;  %v2261_v18 = vor.u32 %v3164_v12, %v2258_v13  ;;  %v2186_v23 = vld [vmem:[#allocation2 + $0xa8] sm:$0xf0]  ;;  %v3162_v24 = vld [vmem:[#allocation2 + $0x124] sm:$0xf] }
  0x46   :  { %938 = vmatpush.bf16.msrb.mxu3 %v2569_v50  ;;  %v3184_v50 = vld [vmem:[#allocation2 + $0x1d4] sm:$0xf]  ;;  %v2314_v27 = vld [vmem:[#allocation2 + $0x1a8] sm:$0xf0]  ;;  %v2114_v33 = vld [vmem:[#allocation2 + $0x18] sm:$0xf0] }
  0x47   :  { %900 = vmatpush.bf16.msrb.mxu0 %v2369_v56  ;;  %v2138_v56 = vld [vmem:[#allocation2 + $0x48] sm:$0xf0]  ;;  %v2341_v59 = vor.u32 %v3184_v50, %v2338_v51  ;;  %v3128_v32 = vld [vmem:[#allocation2 + $0x14] sm:$0xf]  ;;  %v2178_v38 = vld [vmem:[#allocation2 + $0x98] sm:$0xf0] }
  0x48   :  { %913 = vmatpush.bf16.msrb.mxu1 %v2433_v60  ;;  %v2202_v60 = vld [vmem:[#allocation2 + $0xc8] sm:$0xf0]  ;;  %v3144_v34 = vld [vmem:[#allocation2 + $0x94] sm:$0xf]  ;;  %v2306_v43 = vld [vmem:[#allocation2 + $0x198] sm:$0xf0]  ;;  %v2117_v44 = vor.u32 %v3128_v32, %v2114_v33 }
  0x49   :  { %926 = vmatpush.bf16.msrb.mxu2 %v2497_v61  ;;  %v3166_v61 = vld [vmem:[#allocation2 + $0x144] sm:$0xf]  ;;  %v2205_v2 = vor.u32 %v3150_v58, %v2202_v60  ;;  %v2181_v47 = vor.u32 %v3144_v34, %v2178_v38  ;;  %v2170_v50 = vld [vmem:[#allocation2 + $0x88] sm:$0xf0]  ;;  %v2418_v58 = vld [vmem:[#allocation2 + $0x278] sm:$0xf0] }
  0x4a   :  { %939 = vmatpush.bf16.msrb.mxu3 %v2561_v1  ;;  %v2141_v1 = vor.u32 %v3134_v55, %v2138_v56  ;;  %v2269_v3 = vor.u32 %v3166_v61, %v2266_v62  ;;  %v3126_v45 = vld [vmem:[#allocation2 + $0x4] sm:$0xf]  ;;  %v2298_v55 = vld [vmem:[#allocation2 + $0x188] sm:$0xf0]  ;;  %v3204_v56 = vld [vmem:[#allocation2 + $0x274] sm:$0xf] }
  0x4b   :  { %901 = vmatpush.bf16.msrb.mxu0 %v2361_v11  ;;  %v2194_v11 = vld [vmem:[#allocation2 + $0xb8] sm:$0xf0]  ;;  %v3142_v49 = vld [vmem:[#allocation2 + $0x84] sm:$0xf]  ;;  %v3236_v62 = vld [vmem:[#allocation2 + $0x374] sm:$0xf] }
  0x4c   :  { %914 = vmatpush.bf16.msrb.mxu1 %v2425_v15  ;;  %v2322_v15 = vld [vmem:[#allocation2 + $0x1b8] sm:$0xf0]  ;;  %v2197_v17 = vor.u32 %v3148_v9, %v2194_v11  ;;  %v3158_v51 = vld [vmem:[#allocation2 + $0x104] sm:$0xf]  ;;  %v2173_v0 = vor.u32 %v3142_v49, %v2170_v50  ;;  %v2410_v12 = vld [vmem:[#allocation2 + $0x268] sm:$0xf0] }
  0x4d   :  { %927 = vmatpush.bf16.msrb.mxu2 %v2489_v16  ;;  %v2133_v16 = vor.u32 %v3132_v4, %v2130_v8  ;;  %v2325_v22 = vor.u32 %v3180_v14, %v2322_v15  ;;  %v2482_v61 = vld [vmem:[#allocation2 + $0x2f8] sm:$0xf0]  ;;  %v2421_v8 = vor.u32 %v3204_v56, %v2418_v58  ;;  %v3202_v11 = vld [vmem:[#allocation2 + $0x264] sm:$0xf]  ;;  %v2474_v15 = vld [vmem:[#allocation2 + $0x2e8] sm:$0xf0] }
  0x4e   :  { %940 = vmatpush.bf16.msrb.mxu3 %v2553_v20  ;;  %902 = vmatmul.bf16.vlgmr.msrb.gmra.mxu0 %v3552_v35  ;;  %v2122_v20 = vld [vmem:[#allocation2 + $0x28] sm:$0xf0]  ;;  %v2546_v63 = vld [vmem:[#allocation2 + $0x378] sm:$0xf0]  ;;  %v3218_v13 = vld [vmem:[#allocation2 + $0x2e4] sm:$0xf] }
  0x4f   :  { %946 = vmatpush.bf16.msra.mxu0 %v2165_v21  ;;  %915 = vmatmul.bf16.vlgmr.msrb.gmra.mxu1 %v3556_v40  ;;  %v3146_v21 = vld [vmem:[#allocation2 + $0xa4] sm:$0xf]  ;;  %v2125_v28 = vor.u32 %v3130_v19, %v2122_v20  ;;  %v2602_v19 = vld [vmem:[#allocation2 + $0x3e8] sm:$0xf0]  ;;  %v2413_v20 = vor.u32 %v3202_v11, %v2410_v12  ;;  %v2594_v32 = vld [vmem:[#allocation2 + $0x3d8] sm:$0xf0] }
  0x50   :  { %959 = vmatpush.bf16.msra.mxu1 %v2229_v25  ;;  %928 = vmatmul.bf16.vlgmr.msrb.gmra.mxu2 %v3550_v31  ;;  %v2250_v25 = vld [vmem:[#allocation2 + $0x128] sm:$0xf0]  ;;  %v2189_v29 = vor.u32 %v3146_v21, %v2186_v23  ;;  %v2477_v21 = vor.u32 %v3218_v13, %v2474_v15  ;;  %v3200_v23 = vld [vmem:[#allocation2 + $0x254] sm:$0xf]  ;;  %v3198_v38 = vld [vmem:[#allocation2 + $0x244] sm:$0xf] }
  0x51   :  { %972 = vmatpush.bf16.msra.mxu2 %v2293_v26  ;;  %941 = vmatmul.bf16.vlgmr.msrb.gmra.mxu3 %v3554_v36  ;;  %v3178_v26 = vld [vmem:[#allocation2 + $0x1a4] sm:$0xf]  ;;  %v3212_v49 = vld [vmem:[#allocation2 + $0x2b4] sm:$0xf]  ;;  %v2370_v12 = vld [vmem:[#allocation2 + $0x218] sm:$0xf0] }
  0x52   :  { %985 = vmatpush.bf16.msra.mxu3 %v2357_v30  ;;  %v2253_v30 = vor.u32 %v3162_v24, %v2250_v25  ;;  %v2317_v37 = vor.u32 %v3178_v26, %v2314_v27  ;;  %v2402_v24 = vld [vmem:[#allocation2 + $0x258] sm:$0xf0]  ;;  %v3216_v25 = vld [vmem:[#allocation2 + $0x2d4] sm:$0xf] }
  0x53   :  { %947 = vmatpush.bf16.msra.mxu0 %v2157_v39  ;;  %v3160_v39 = vld [vmem:[#allocation2 + $0x114] sm:$0xf]  ;;  %v2466_v27 = vld [vmem:[#allocation2 + $0x2d8] sm:$0xf0]  ;;  %v2405_v33 = vor.u32 %v3200_v23, %v2402_v24  ;;  %v2362_v24 = vld [vmem:[#allocation2 + $0x208] sm:$0xf0] }
  0x54   :  { %960 = vmatpush.bf16.msra.mxu1 %v2221_v41  ;;  %v2242_v41 = vld [vmem:[#allocation2 + $0x118] sm:$0xf0]  ;;  %v2469_v34 = vor.u32 %v3216_v25, %v2466_v27  ;;  %v3192_v11 = vld [vmem:[#allocation2 + $0x214] sm:$0xf]  ;;  %v3206_v25 = vld [vmem:[#allocation2 + $0x284] sm:$0xf] }
  0x55   :  { %973 = vmatpush.bf16.msra.mxu2 %v2285_v42  ;;  %v3176_v42 = vld [vmem:[#allocation2 + $0x194] sm:$0xf]  ;;  %v2245_v48 = vor.u32 %v3160_v39, %v2242_v41  ;;  %v2394_v39 = vld [vmem:[#allocation2 + $0x248] sm:$0xf0]  ;;  %v2434_v15 = vld [vmem:[#allocation2 + $0x298] sm:$0xf0] }
  0x56   :  { %986 = vmatpush.bf16.msra.mxu3 %v2349_v46  ;;  %v2106_v46 = vld [vmem:[#allocation2 + $0x8] sm:$0xf0]  ;;  %v3208_v13 = vld [vmem:[#allocation2 + $0x294] sm:$0xf] }
  0x57   :  { %948 = vmatpush.bf16.msra.mxu0 %v2149_v52  ;;  %v2309_v52 = vor.u32 %v3176_v42, %v2306_v43  ;;  %v2109_v60 = vor.u32 %v3126_v45, %v2106_v46  ;;  %v2458_v42 = vld [vmem:[#allocation2 + $0x2c8] sm:$0xf0]  ;;  %v3230_v43 = vld [vmem:[#allocation2 + $0x344] sm:$0xf] }
  0x58   :  { %961 = vmatpush.bf16.msra.mxu1 %v2213_v53  ;;  %v2234_v53 = vld [vmem:[#allocation2 + $0x108] sm:$0xf0]  ;;  %v3246_v45 = vld [vmem:[#allocation2 + $0x3c4] sm:$0xf] }
  0x59   :  { %974 = vmatpush.bf16.msra.mxu2 %v2277_v54  ;;  %v3174_v54 = vld [vmem:[#allocation2 + $0x184] sm:$0xf] }
  0x5a   :  { %987 = vmatpush.bf16.msra.mxu3 %v2341_v59  ;;  %v3220_v59 = vld [vmem:[#allocation2 + $0x2f4] sm:$0xf]  ;;  %v2301_v4 = vor.u32 %v3174_v54, %v2298_v55  ;;  %v2578_v55 = vld [vmem:[#allocation2 + $0x3b8] sm:$0xf0] }
  0x5b   :  { %949 = vmatpush.bf16.msra.mxu0 %v2141_v1  ;;  %v2237_v1 = vor.u32 %v3158_v51, %v2234_v53  ;;  %v2485_v9 = vor.u32 %v3220_v59, %v2482_v61  ;;  %v2450_v51 = vld [vmem:[#allocation2 + $0x2b8] sm:$0xf0]  ;;  %v3244_v54 = vld [vmem:[#allocation2 + $0x3b4] sm:$0xf]  ;;  %v2378_v61 = vld [vmem:[#allocation2 + $0x228] sm:$0xf0] }
  0x5c   :  { %962 = vmatpush.bf16.msra.mxu1 %v2205_v2  ;;  %v3252_v2 = vld [vmem:[#allocation2 + $0x3f4] sm:$0xf]  ;;  %v2514_v53 = vld [vmem:[#allocation2 + $0x338] sm:$0xf0]  ;;  %v2453_v58 = vor.u32 %v3212_v49, %v2450_v51  ;;  %v3298_v49 = vld [vmem:[#allocation4 + $0x15c] sm:$0xf0] }
  0x5d   :  { %975 = vmatpush.bf16.msra.mxu2 %v2269_v3  ;;  %v2610_v3 = vld [vmem:[#allocation2 + $0x3f8] sm:$0xf0]  ;;  %v2778_v51 = vld [vmem:[#allocation4 + $0x160] sm:$0xf0] }
  0x5e   :  { %988 = vmatpush.bf16.msra.mxu3 %v2333_v10  ;;  %v2549_v10 = vor.u32 %v3236_v62, %v2546_v63  ;;  %v2613_v14 = vor.u32 %v3252_v2, %v2610_v3  ;;  %v3210_v62 = vld [vmem:[#allocation2 + $0x2a4] sm:$0xf]  ;;  %v2581_v63 = vor.u32 %v3244_v54, %v2578_v55  ;;  %v2506_v2 = vld [vmem:[#allocation2 + $0x328] sm:$0xf0]  ;;  %v2744_v54 = vld [vmem:[#allocation4 + $0x100] sm:$0xf] }
  0x5f   :  { %950 = vmatpush.bf16.msra.mxu0 %v2133_v16  ;;  %v3234_v16 = vld [vmem:[#allocation2 + $0x364] sm:$0xf]  ;;  %v3290_v55 = vld [vmem:[#allocation4 + $0x11c] sm:$0xf0] }
  0x60   :  { %963 = vmatpush.bf16.msra.mxu1 %v2197_v17  ;;  %v2538_v17 = vld [vmem:[#allocation2 + $0x368] sm:$0xf0]  ;;  %v3242_v3 = vld [vmem:[#allocation2 + $0x3a4] sm:$0xf] }
  0x61   :  { %976 = vmatpush.bf16.msra.mxu2 %v2261_v18  ;;  %v3250_v18 = vld [vmem:[#allocation2 + $0x3e4] sm:$0xf] }
  0x62   :  { %989 = vmatpush.bf16.msra.mxu3 %v2325_v22  ;;  %v2541_v22 = vor.u32 %v3234_v16, %v2538_v17  ;;  %v2605_v26 = vor.u32 %v3250_v18, %v2602_v19  ;;  %v3224_v16 = vld [vmem:[#allocation2 + $0x314] sm:$0xf]  ;;  %v2498_v17 = vld [vmem:[#allocation2 + $0x318] sm:$0xf0] }
  0x63   :  { %951 = vmatpush.bf16.msra.mxu0 %v2125_v28  ;;  %v3232_v28 = vld [vmem:[#allocation2 + $0x354] sm:$0xf]  ;;  %v2562_v19 = vld [vmem:[#allocation2 + $0x398] sm:$0xf0]  ;;  %v2501_v23 = vor.u32 %v3224_v16, %v2498_v17  ;;  %v3254_v16 = vld [vmem:[#allocation4 + $0x4] sm:$0xf] }
  0x64   :  { %964 = vmatpush.bf16.msra.mxu1 %v2189_v29  ;;  %v2530_v29 = vld [vmem:[#allocation2 + $0x358] sm:$0xf0]  ;;  %v3240_v18 = vld [vmem:[#allocation2 + $0x394] sm:$0xf]  ;;  %v2618_v17 = vld [vmem:[#allocation4 + $0x20] sm:$0xf0] }
  0x65   :  { %977 = vmatpush.bf16.msra.mxu2 %v2253_v30  ;;  %v3248_v30 = vld [vmem:[#allocation2 + $0x3d4] sm:$0xf]  ;;  %v2565_v27 = vor.u32 %v3240_v18, %v2562_v19  ;;  %v2848_v18 = vld [vmem:[#allocation4 + $0x1c8] sm:$0xf] }
  0x66   :  { %990 = vmatpush.bf16.msra.mxu3 %v2317_v37  ;;  %v2533_v37 = vor.u32 %v3232_v28, %v2530_v29  ;;  %v2597_v41 = vor.u32 %v3248_v30, %v2594_v32  ;;  %v3222_v28 = vld [vmem:[#allocation2 + $0x304] sm:$0xf]  ;;  %v2490_v29 = vld [vmem:[#allocation2 + $0x308] sm:$0xf0]  ;;  %v3315_v19 = vld [vmem:[#allocation4 + $0x1e4] sm:$0xf0] }
  0x67   :  { %952 = vmatpush.bf16.msra.mxu0 %v2117_v44  ;;  %v2522_v44 = vld [vmem:[#allocation2 + $0x348] sm:$0xf0]  ;;  %v3238_v30 = vld [vmem:[#allocation2 + $0x384] sm:$0xf] }
  0x68   :  { %965 = vmatpush.bf16.msra.mxu1 %v2181_v47  ;;  %v3196_v47 = vld [vmem:[#allocation2 + $0x234] sm:$0xf]  ;;  %v2554_v32 = vld [vmem:[#allocation2 + $0x388] sm:$0xf0] }
  0x69   :  { %978 = vmatpush.bf16.msra.mxu2 %v2245_v48  ;;  %v2386_v48 = vld [vmem:[#allocation2 + $0x238] sm:$0xf0] }
  0x6a   :  { %991 = vmatpush.bf16.msra.mxu3 %v2309_v52  ;;  %v3228_v52 = vld [vmem:[#allocation2 + $0x334] sm:$0xf]  ;;  %v2389_v56 = vor.u32 %v3196_v47, %v2386_v48  ;;  %v2776_v48 = vld [vmem:[#allocation4 + $0x140] sm:$0xf] }
  0x6b   :  { %953 = vmatpush.bf16.msra.mxu0 %v2109_v60  ;;  %v2517_v59 = vor.u32 %v3228_v52, %v2514_v53  ;;  %v3194_v60 = vld [vmem:[#allocation2 + $0x224] sm:$0xf]  ;;  %v2777_v52 = vor.u32 %v3298_v49, %v2776_v48 }
  0x6c   :  { %966 = vmatpush.bf16.msra.mxu1 %v2173_v0  ;;  %v2442_v0 = vld [vmem:[#allocation2 + $0x2a8] sm:$0xf0] }
  0x6d   :  { %979 = vmatpush.bf16.msra.mxu2 %v2237_v1  ;;  %v3226_v1 = vld [vmem:[#allocation2 + $0x324] sm:$0xf] }
  0x6e   :  { %992 = vmatpush.bf16.msra.mxu3 %v2301_v4  ;;  %954 = vmatmul.bf16.vlgmr.msra.gmra.mxu0 %v3529_v5  ;;  %v2586_v5 = vld [vmem:[#allocation2 + $0x3c8] sm:$0xf0] }
  0x6f   :  { %998 = vmatpush.bf16.msrb.mxu0 %v2421_v8  ;;  %967 = vmatmul.bf16.vlgmr.msra.gmra.mxu1 %v3533_v7  ;;  %v2525_v7 = vor.u32 %v3230_v43, %v2522_v44  ;;  %v2589_v50 = vor.u32 %v3246_v45, %v2586_v5  ;;  %v2570_v4 = vld [vmem:[#allocation2 + $0x3a8] sm:$0xf0]  ;;  %v2381_v8 = vor.u32 %v3194_v60, %v2378_v61  ;;  %v2808_v45 = vld [vmem:[#allocation4 + $0x180] sm:$0xf]  ;;  %v3278_v61 = vld [vmem:[#allocation4 + $0xc4] sm:$0xf] }
  0x70   :  { %1011 = vmatpush.bf16.msrb.mxu1 %v2485_v9  ;;  %980 = vmatmul.bf16.vlgmr.msra.gmra.mxu2 %v3517_v57  ;;  %v3214_v57 = vld [vmem:[#allocation2 + $0x2c4] sm:$0xf]  ;;  %v2445_v9 = vor.u32 %v3210_v62, %v2442_v0  ;;  %v3306_v5 = vld [vmem:[#allocation4 + $0x19c] sm:$0xf0] }
  0x71   :  { %1024 = vmatpush.bf16.msrb.mxu2 %v2549_v10  ;;  %993 = vmatmul.bf16.vlgmr.msra.gmra.mxu3 %v3531_v6  ;;  %v2397_v6 = vor.u32 %v3198_v38, %v2394_v39  ;;  %v2461_v46 = vor.u32 %v3214_v57, %v2458_v42  ;;  %v2509_v10 = vor.u32 %v3226_v1, %v2506_v2  ;;  %v3310_v38 = vld [vmem:[#allocation4 + $0x1c4] sm:$0xf]  ;;  %v2712_v60 = vld [vmem:[#allocation4 + $0xc0] sm:$0xf] }
  0x72   :  { %1037 = vmatpush.bf16.msrb.mxu3 %v2613_v14  ;;  %v2573_v14 = vor.u32 %v3242_v3, %v2570_v4  ;;  %v2842_v39 = vld [vmem:[#allocation4 + $0x1e0] sm:$0xf0]  ;;  %v2557_v42 = vor.u32 %v3238_v30, %v2554_v32  ;;  %v3274_v0 = vld [vmem:[#allocation4 + $0x9c] sm:$0xf0] }
  0x73   :  { %999 = vmatpush.bf16.msrb.mxu0 %v2413_v20  ;;  %v2373_v20 = vor.u32 %v3192_v11, %v2370_v12  ;;  %v2845_v44 = vor.u32 %v3310_v38, %v2842_v39  ;;  %v3270_v1 = vld [vmem:[#allocation4 + $0x84] sm:$0xf]  ;;  %v2786_v38 = vld [vmem:[#allocation4 + $0x168] sm:$0xf0] }
  0x74   :  { %1012 = vmatpush.bf16.msrb.mxu1 %v2477_v21  ;;  %v3190_v21 = vld [vmem:[#allocation2 + $0x204] sm:$0xf] }
  0x75   :  { %1025 = vmatpush.bf16.msrb.mxu2 %v2541_v22  ;;  %v2437_v22 = vor.u32 %v3208_v13, %v2434_v15  ;;  %v2682_v2 = vld [vmem:[#allocation4 + $0xa0] sm:$0xf0]  ;;  %v3258_v15 = vld [vmem:[#allocation4 + $0x1c] sm:$0xf0] }
  0x76   :  { %1038 = vmatpush.bf16.msrb.mxu3 %v2605_v26  ;;  %v2426_v26 = vld [vmem:[#allocation2 + $0x288] sm:$0xf0]  ;;  %v2685_v4 = vor.u32 %v3270_v1, %v2682_v2  ;;  %v2650_v11 = vld [vmem:[#allocation4 + $0x60] sm:$0xf0]  ;;  %v2624_v1 = vld [vmem:[#allocation4 + $0x8] sm:$0xf] }
  0x77   :  { %1000 = vmatpush.bf16.msrb.mxu0 %v2405_v33  ;;  %v2840_v33 = vld [vmem:[#allocation4 + $0x1c0] sm:$0xf]  ;;  %v2429_v57 = vor.u32 %v3206_v25, %v2426_v26  ;;  %v2816_v26 = vld [vmem:[#allocation4 + $0x188] sm:$0xf] }
  0x78   :  { %1013 = vmatpush.bf16.msrb.mxu1 %v2469_v34  ;;  %v3314_v34 = vld [vmem:[#allocation4 + $0x1dc] sm:$0xf0]  ;;  %v3259_v2 = vld [vmem:[#allocation4 + $0x24] sm:$0xf0] }
  0x79   :  { %1026 = vmatpush.bf16.msrb.mxu2 %v2533_v37  ;;  %v2365_v37 = vor.u32 %v3190_v21, %v2362_v24  ;;  %v2841_v43 = vor.u32 %v3314_v34, %v2840_v33  ;;  %v2850_v21 = vld [vmem:[#allocation4 + $0x1e8] sm:$0xf0]  ;;  %v2849_v24 = vor.u32 %v3315_v19, %v2848_v18  ;;  %v2784_v33 = vld [vmem:[#allocation4 + $0x148] sm:$0xf]  ;;  %v2625_v19 = vor.u32 %v3259_v2, %v2624_v1  ;;  %v2856_v1 = vld [vmem:[#allocation4 + $0x1d0] sm:$0xf] }
  0x7a   :  { %1039 = vmatpush.bf16.msrb.mxu3 %v2597_v41  ;;  %v2493_v41 = vor.u32 %v3222_v28, %v2490_v29  ;;  %v3303_v28 = vld [vmem:[#allocation4 + $0x18c] sm:$0xf]  ;;  %v3299_v34 = vld [vmem:[#allocation4 + $0x164] sm:$0xf0]  ;;  %v2872_v2 = vld [vmem:[#allocation4 + $0x200] sm:$0xf] }
  0x7b   :  { %1001 = vmatpush.bf16.msrb.mxu0 %v2397_v6  ;;  %v3302_v6 = vld [vmem:[#allocation4 + $0x184] sm:$0xf]  ;;  %v2818_v29 = vld [vmem:[#allocation4 + $0x1a8] sm:$0xf0]  ;;  %v2785_v39 = vor.u32 %v3299_v34, %v2784_v33 }
  0x7c   :  { %1014 = vmatpush.bf16.msrb.mxu1 %v2461_v46  ;;  %v2810_v46 = vld [vmem:[#allocation4 + $0x1a0] sm:$0xf0]  ;;  %v2821_v32 = vor.u32 %v3303_v28, %v2818_v29 }
  0x7d   :  { %1027 = vmatpush.bf16.msrb.mxu2 %v2525_v7  ;;  %v2809_v7 = vor.u32 %v3306_v5, %v2808_v45  ;;  %v2813_v47 = vor.u32 %v3302_v6, %v2810_v46  ;;  %v2720_v6 = vld [vmem:[#allocation4 + $0xc8] sm:$0xf]  ;;  %v3358_v29 = vld [vmem:[#allocation4 + $0x344] sm:$0xf] }
  0x7e   :  { %1040 = vmatpush.bf16.msrb.mxu3 %v2589_v50  ;;  %v3294_v50 = vld [vmem:[#allocation4 + $0x144] sm:$0xf]  ;;  %v3283_v46 = vld [vmem:[#allocation4 + $0xe4] sm:$0xf0] }
  0x7f   :  { %1002 = vmatpush.bf16.msrb.mxu0 %v2389_v56  ;;  %v2781_v53 = vor.u32 %v3294_v50, %v2778_v51  ;;  %v3286_v56 = vld [vmem:[#allocation4 + $0x104] sm:$0xf]  ;;  %v2721_v49 = vor.u32 %v3283_v46, %v2720_v6 }
  0x80   :  { %1015 = vmatpush.bf16.msrb.mxu1 %v2453_v58  ;;  %v2745_v58 = vor.u32 %v3290_v55, %v2744_v54  ;;  %v3271_v55 = vld [vmem:[#allocation4 + $0x8c] sm:$0xf]  ;;  %v2970_v6 = vld [vmem:[#allocation4 + $0x2e0] sm:$0xf0] }
  0x81   :  { %1028 = vmatpush.bf16.msrb.mxu2 %v2517_v59 }
  0x82   :  { %1041 = vmatpush.bf16.msrb.mxu3 %v2581_v63  ;;  %v2680_v63 = vld [vmem:[#allocation4 + $0x80] sm:$0xf] }
  0x83   :  { %1003 = vmatpush.bf16.msrb.mxu0 %v2381_v8  ;;  %v2681_v3 = vor.u32 %v3274_v0, %v2680_v63  ;;  %v2648_v8 = vld [vmem:[#allocation4 + $0x40] sm:$0xf] }
  0x84   :  { %1016 = vmatpush.bf16.msrb.mxu1 %v2445_v9  ;;  %v3266_v9 = vld [vmem:[#allocation4 + $0x5c] sm:$0xf0] }
  0x85   :  { %1029 = vmatpush.bf16.msrb.mxu2 %v2509_v10  ;;  %v3262_v10 = vld [vmem:[#allocation4 + $0x44] sm:$0xf]  ;;  %v2649_v12 = vor.u32 %v3266_v9, %v2648_v8  ;;  %v3096_v8 = vld [vmem:[#allocation4 + $0x3c0] sm:$0xf] }
  0x86   :  { %1042 = vmatpush.bf16.msrb.mxu3 %v2573_v14  ;;  %v2653_v13 = vor.u32 %v3262_v10, %v2650_v11  ;;  %v2616_v14 = vld [vmem:[#allocation4] sm:$0xf]  ;;  %v3374_v10 = vld [vmem:[#allocation4 + $0x3c4] sm:$0xf] }
  0x87   :  { %1004 = vmatpush.bf16.msrb.mxu0 %v2373_v20  ;;  %v3311_v20 = vld [vmem:[#allocation4 + $0x1cc] sm:$0xf]  ;;  %v3378_v9 = vld [vmem:[#allocation4 + $0x3dc] sm:$0xf0] }
  0x88   :  { %1017 = vmatpush.bf16.msrb.mxu1 %v2437_v22  ;;  %v2617_v22 = vor.u32 %v3258_v15, %v2616_v14  ;;  %v2853_v25 = vor.u32 %v3311_v20, %v2850_v21  ;;  %v3097_v14 = vor.u32 %v3378_v9, %v3096_v8  ;;  %v3098_v15 = vld [vmem:[#allocation4 + $0x3e0] sm:$0xf0]  ;;  %v3370_v20 = vld [vmem:[#allocation4 + $0x39c] sm:$0xf0]  ;;  %v3316_v8 = vld [vmem:[#allocation4 + $0x1ec] sm:$0xf0] }
  0x89   :  { %1030 = vmatpush.bf16.msrb.mxu2 %v2501_v23  ;;  %v2621_v23 = vor.u32 %v3254_v16, %v2618_v17  ;;  %v3101_v16 = vor.u32 %v3374_v10, %v3098_v15  ;;  %v3064_v17 = vld [vmem:[#allocation4 + $0x380] sm:$0xf]  ;;  %v3366_v21 = vld [vmem:[#allocation4 + $0x384] sm:$0xf]  ;;  %v3312_v9 = vld [vmem:[#allocation4 + $0x1d4] sm:$0xf] }
  0x8a   :  { %1043 = vmatpush.bf16.msrb.mxu3 %v2565_v27  ;;  %v3307_v27 = vld [vmem:[#allocation4 + $0x1a4] sm:$0xf0]  ;;  %v2858_v10 = vld [vmem:[#allocation4 + $0x1f0] sm:$0xf0]  ;;  %v2874_v15 = vld [vmem:[#allocation4 + $0x220] sm:$0xf0] }
  0x8b   :  { %1005 = vmatpush.bf16.msrb.mxu0 %v2365_v37  ;;  %v2817_v30 = vor.u32 %v3307_v27, %v2816_v26  ;;  %v3295_v37 = vld [vmem:[#allocation4 + $0x14c] sm:$0xf]  ;;  %v3032_v26 = vld [vmem:[#allocation4 + $0x340] sm:$0xf] }
  0x8c   :  { %1018 = vmatpush.bf16.msrb.mxu1 %v2429_v57  ;;  %v2789_v57 = vor.u32 %v3295_v37, %v2786_v38  ;;  %v3362_v27 = vld [vmem:[#allocation4 + $0x35c] sm:$0xf0] }
  0x8d   :  { %1031 = vmatpush.bf16.msrb.mxu2 %v2493_v41  ;;  %v2752_v41 = vld [vmem:[#allocation4 + $0x108] sm:$0xf]  ;;  %v3033_v33 = vor.u32 %v3362_v27, %v3032_v26  ;;  %v3000_v37 = vld [vmem:[#allocation4 + $0x300] sm:$0xf]  ;;  %v2826_v26 = vld [vmem:[#allocation4 + $0x1b0] sm:$0xf0] }
  0x8e   :  { %1044 = vmatpush.bf16.msrb.mxu3 %v2557_v42  ;;  %1006 = vmatmul.bf16.vlgmr.msrb.gmra.mxu0 %v3552_v35  ;;  %v2746_v35 = vld [vmem:[#allocation4 + $0x120] sm:$0xf0]  ;;  %v3291_v42 = vld [vmem:[#allocation4 + $0x124] sm:$0xf0]  ;;  %v3354_v38 = vld [vmem:[#allocation4 + $0x31c] sm:$0xf0] }
  0x8f   :  { %1840 = vmatpush.bf16.msra.mxu0 %v2841_v43  ;;  %1019 = vmatmul.bf16.vlgmr.msrb.gmra.mxu1 %v3556_v40  ;;  %v2749_v59 = vor.u32 %v3286_v56, %v2746_v35  ;;  %v3282_v40 = vld [vmem:[#allocation4 + $0xdc] sm:$0xf0]  ;;  %v3287_v43 = vld [vmem:[#allocation4 + $0x10c] sm:$0xf]  ;;  %v2753_v45 = vor.u32 %v3291_v42, %v2752_v41  ;;  %v3001_v42 = vor.u32 %v3354_v38, %v3000_v37  ;;  %v3371_v37 = vld [vmem:[#allocation4 + $0x3a4] sm:$0xf0] }
  0x90   :  { %1032 = vmatmul.bf16.vlgmr.msrb.gmra.mxu2 %v3550_v31  ;;  %v2714_v31 = vld [vmem:[#allocation4 + $0xe0] sm:$0xf0]  ;;  %v2713_v62 = vor.u32 %v3282_v40, %v2712_v60  ;;  %v2690_v56 = vld [vmem:[#allocation4 + $0xa8] sm:$0xf0]  ;;  %v2656_v60 = vld [vmem:[#allocation4 + $0x48] sm:$0xf]  ;;  %1853 = vmatpush.bf16.msra.mxu1 %v3097_v14 }
  0x91   :  { %1866 = vmatpush.bf16.msra.mxu2 %v2845_v44  ;;  %1045 = vmatmul.bf16.vlgmr.msrb.gmra.mxu3 %v3554_v36  ;;  %v2717_v36 = vor.u32 %v3278_v61, %v2714_v31  ;;  %v2754_v44 = vld [vmem:[#allocation4 + $0x128] sm:$0xf0]  ;;  %v3267_v40 = vld [vmem:[#allocation4 + $0x64] sm:$0xf0]  ;;  %v3318_v14 = vld [vmem:[#allocation4 + $0x204] sm:$0xf] }
  0x92   :  { %v2757_v5 = vor.u32 %v3287_v43, %v2754_v44  ;;  %v3263_v61 = vld [vmem:[#allocation4 + $0x4c] sm:$0xf]  ;;  %v2657_v0 = vor.u32 %v3267_v40, %v2656_v60  ;;  %1879 = vmatpush.bf16.msra.mxu3 %v3101_v16  ;;  %v2968_v44 = vld [vmem:[#allocation4 + $0x2c0] sm:$0xf]  ;;  %v3326_v40 = vld [vmem:[#allocation4 + $0x244] sm:$0xf]  ;;  %v2877_v27 = vor.u32 %v3318_v14, %v2874_v15 }
  0x93   :  { %1841 = vmatpush.bf16.msra.mxu0 %v2809_v7  ;;  %v3279_v7 = vld [vmem:[#allocation4 + $0xcc] sm:$0xf]  ;;  %v3330_v60 = vld [vmem:[#allocation4 + $0x25c] sm:$0xf0]  ;;  %v2698_v14 = vld [vmem:[#allocation4 + $0xb0] sm:$0xf0] }
  0x94   :  { %v2658_v31 = vld [vmem:[#allocation4 + $0x68] sm:$0xf0] }
  0x95   :  { %1867 = vmatpush.bf16.msra.mxu2 %v2813_v47  ;;  %v2722_v47 = vld [vmem:[#allocation4 + $0xe8] sm:$0xf0] }
  0x96   :  { %v2725_v51 = vor.u32 %v3279_v7, %v2722_v47  ;;  %v3367_v38 = vld [vmem:[#allocation4 + $0x38c] sm:$0xf] }
  0x97   :  { %1842 = vmatpush.bf16.msra.mxu0 %v2777_v52  ;;  %v2688_v52 = vld [vmem:[#allocation4 + $0x88] sm:$0xf] }
  0x99   :  { %1868 = vmatpush.bf16.msra.mxu2 %v2781_v53  ;;  %v3275_v53 = vld [vmem:[#allocation4 + $0xa4] sm:$0xf0] }
  0x9a   :  { %v2689_v35 = vor.u32 %v3275_v53, %v2688_v52  ;;  %v2938_v52 = vld [vmem:[#allocation4 + $0x2a0] sm:$0xf0] }
  0x9b   :  { %1843 = vmatpush.bf16.msra.mxu0 %v2745_v58  ;;  %v3573_v58 = vld [vmem:[%s3654_s2] sm:$0x3] }
  0x9d   :  { %1869 = vmatpush.bf16.msra.mxu2 %v2749_v59  ;;  %v2693_v59 = vor.u32 %v3271_v55, %v2690_v56 }
  0x9f   :  { %1844 = vmatpush.bf16.msra.mxu0 %v2713_v62 }
  0xa1   :  { %1870 = vmatpush.bf16.msra.mxu2 %v2717_v36  ;;  %v198_v36 = vperm.slane %v3573_v58, 0 }
  0xa3   :  { %1845 = vmatpush.bf16.msra.mxu0 %v2681_v3 }
  0xa5   :  { %1871 = vmatpush.bf16.msra.mxu2 %v2685_v4  ;;  %v2661_v4 = vor.u32 %v3263_v61, %v2658_v31  ;;  %v2906_v61 = vld [vmem:[#allocation4 + $0x260] sm:$0xf0] }
  0xa7   :  { %1846 = vmatpush.bf16.msra.mxu0 %v2649_v12  ;;  %v3255_v12 = vld [vmem:[#allocation4 + $0xc] sm:$0xf] }
  0xa9   :  { %1872 = vmatpush.bf16.msra.mxu2 %v2653_v13  ;;  %v2626_v13 = vld [vmem:[#allocation4 + $0x28] sm:$0xf0] }
  0xab   :  { %1847 = vmatpush.bf16.msra.mxu0 %v2617_v22  ;;  %v851_v48 = vpop.f32.mrf.mxu0  ;;  %v3066_v22 = vld [vmem:[#allocation4 + $0x3a0] sm:$0xf0] }
  0xac   :  { %v864_v50 = vpop.f32.mrf.mxu1  ;;  %v852_v18 = vadd.f32 %v851_v48, %v198_v36  ;;  %v2936_v48 = vld [vmem:[#allocation4 + $0x280] sm:$0xf] }
  0xad   :  { %1873 = vmatpush.bf16.msra.mxu2 %v2621_v23  ;;  %v2629_v23 = vor.u32 %v3255_v12, %v2626_v13 }
  0xaf   :  { %1892 = vmatpush.bf16.msrb.mxu0 %v2849_v24  ;;  %v3065_v24 = vor.u32 %v3370_v20, %v3064_v17  ;;  %v2824_v17 = vld [vmem:[#allocation4 + $0x190] sm:$0xf]  ;;  %v2861_v20 = vor.u32 %v3312_v9, %v2858_v10  ;;  %v2976_v10 = vld [vmem:[#allocation4 + $0x2c8] sm:$0xf] }
  0xb1   :  { %1918 = vmatpush.bf16.msrb.mxu2 %v2853_v25  ;;  %v3069_v25 = vor.u32 %v3366_v21, %v3066_v22  ;;  %1854 = vmatpush.bf16.msra.mxu1 %v3065_v24  ;;  %v3104_v21 = vld [vmem:[#allocation4 + $0x3c8] sm:$0xf] }
  0xb2   :  { %v3379_v22 = vld [vmem:[#allocation4 + $0x3e4] sm:$0xf0] }
  0xb3   :  { %1893 = vmatpush.bf16.msrb.mxu0 %v2817_v30  ;;  %v877_v54 = vpop.f32.mrf.mxu2  ;;  %v853_v63 = vpop.f32.mrf.mxu0  ;;  %v3034_v30 = vld [vmem:[#allocation4 + $0x360] sm:$0xf0]  ;;  %1880 = vmatpush.bf16.msra.mxu3 %v3069_v25  ;;  %v3304_v25 = vld [vmem:[#allocation4 + $0x194] sm:$0xf] }
  0xb4   :  { %v890_v62 = vpop.f32.mrf.mxu3  ;;  %v866_v3 = vpop.f32.mrf.mxu1  ;;  %v3037_v34 = vor.u32 %v3358_v29, %v3034_v30  ;;  %v3106_v29 = vld [vmem:[#allocation4 + $0x3e8] sm:$0xf0] }
  0xb5   :  { %1919 = vmatpush.bf16.msrb.mxu2 %v2821_v32  ;;  %v865_v32 = vadd.f32 %v864_v50, %v852_v18  ;;  %1855 = vmatpush.bf16.msra.mxu1 %v3033_v33  ;;  %v3322_v3 = vld [vmem:[#allocation4 + $0x21c] sm:$0xf0]  ;;  %v3308_v18 = vld [vmem:[#allocation4 + $0x1ac] sm:$0xf0] }
  0xb6   :  { %v2873_v13 = vor.u32 %v3322_v3, %v2872_v2  ;;  %v2696_v3 = vld [vmem:[#allocation4 + $0x90] sm:$0xf] }
  0xb7   :  { %1894 = vmatpush.bf16.msrb.mxu0 %v2785_v39  ;;  %v3350_v39 = vld [vmem:[#allocation4 + $0x304] sm:$0xf]  ;;  %v878_v41 = vadd.f32 %v877_v54, %v865_v32  ;;  %1881 = vmatpush.bf16.msra.mxu3 %v3037_v34  ;;  %v3072_v34 = vld [vmem:[#allocation4 + $0x388] sm:$0xf] }
  0xb9   :  { %1920 = vmatpush.bf16.msrb.mxu2 %v2789_v57  ;;  %v3002_v57 = vld [vmem:[#allocation4 + $0x320] sm:$0xf0]  ;;  %v891_v46 = vadd.f32 %v890_v62, %v878_v41  ;;  %1856 = vmatpush.bf16.msra.mxu1 %v3001_v42  ;;  %v2792_v41 = vld [vmem:[#allocation4 + $0x150] sm:$0xf]  ;;  %v3074_v42 = vld [vmem:[#allocation4 + $0x3a8] sm:$0xf0] }
  0xba   :  { %v3005_v43 = vor.u32 %v3350_v39, %v3002_v57  ;;  %v2825_v39 = vor.u32 %v3308_v18, %v2824_v17  ;;  %v2829_v57 = vor.u32 %v3304_v25, %v2826_v26  ;;  %v2944_v25 = vld [vmem:[#allocation4 + $0x288] sm:$0xf] }
  0xbb   :  { %1895 = vmatpush.bf16.msrb.mxu0 %v2753_v45  ;;  %v879_v11 = vpop.f32.mrf.mxu2  ;;  %v3346_v45 = vld [vmem:[#allocation4 + $0x2dc] sm:$0xf0]  ;;  %v3339_v26 = vld [vmem:[#allocation4 + $0x2a4] sm:$0xf0] }
  0xbc   :  { %v892_v28 = vpop.f32.mrf.mxu3  ;;  %v2969_v7 = vor.u32 %v3346_v45, %v2968_v44  ;;  %1882 = vmatpush.bf16.msra.mxu3 %v3005_v43  ;;  %v3300_v43 = vld [vmem:[#allocation4 + $0x16c] sm:$0xf0]  ;;  %v3296_v44 = vld [vmem:[#allocation4 + $0x154] sm:$0xf] }
  0xbd   :  { %1921 = vmatpush.bf16.msrb.mxu2 %v2757_v5  ;;  %v3342_v5 = vld [vmem:[#allocation4 + $0x2c4] sm:$0xf]  ;;  %v3105_v28 = vor.u32 %v3379_v22, %v3104_v21  ;;  %v2794_v45 = vld [vmem:[#allocation4 + $0x170] sm:$0xf0] }
  0xbe   :  { %v2973_v47 = vor.u32 %v3342_v5, %v2970_v6  ;;  %1857 = vmatpush.bf16.msra.mxu1 %v2969_v7  ;;  %v3073_v5 = vor.u32 %v3371_v37, %v3072_v34  ;;  %v3077_v6 = vor.u32 %v3367_v38, %v3074_v42  ;;  %v3363_v7 = vld [vmem:[#allocation4 + $0x364] sm:$0xf0]  ;;  %v2632_v34 = vld [vmem:[#allocation4 + $0x10] sm:$0xf]  ;;  %v3256_v38 = vld [vmem:[#allocation4 + $0x14] sm:$0xf] }
  0xbf   :  { %1896 = vmatpush.bf16.msrb.mxu0 %v2721_v49  ;;  %v3338_v49 = vld [vmem:[#allocation4 + $0x29c] sm:$0xf0]  ;;  %v3260_v37 = vld [vmem:[#allocation4 + $0x2c] sm:$0xf0]  ;;  %v2912_v42 = vld [vmem:[#allocation4 + $0x248] sm:$0xf] }
  0xc0   :  { %v2937_v55 = vor.u32 %v3338_v49, %v2936_v48  ;;  %1883 = vmatpush.bf16.msra.mxu3 %v2973_v47  ;;  %v3359_v47 = vld [vmem:[#allocation4 + $0x34c] sm:$0xf]  ;;  %v2793_v49 = vor.u32 %v3300_v43, %v2792_v41  ;;  %v3331_v43 = vld [vmem:[#allocation4 + $0x264] sm:$0xf0] }
  0xc1   :  { %1922 = vmatpush.bf16.msrb.mxu2 %v2725_v51  ;;  %v3334_v51 = vld [vmem:[#allocation4 + $0x284] sm:$0xf]  ;;  %v3042_v48 = vld [vmem:[#allocation4 + $0x368] sm:$0xf0] }
  0xc2   :  { %v2941_v56 = vor.u32 %v3334_v51, %v2938_v52  ;;  %1858 = vmatpush.bf16.msra.mxu1 %v2937_v55  ;;  %v2760_v51 = vld [vmem:[#allocation4 + $0x110] sm:$0xf] }
  0xc3   :  { %1897 = vmatpush.bf16.msrb.mxu0 %v2689_v35  ;;  %v3292_v52 = vld [vmem:[#allocation4 + $0x12c] sm:$0xf0] }
  0xc4   :  { %1884 = vmatpush.bf16.msra.mxu3 %v2941_v56  ;;  %v3045_v56 = vor.u32 %v3359_v47, %v3042_v48  ;;  %v3317_v47 = vld [vmem:[#allocation4 + $0x1f4] sm:$0xf0]  ;;  %v3313_v48 = vld [vmem:[#allocation4 + $0x1dc] sm:$0xf] }
  0xc5   :  { %1923 = vmatpush.bf16.msrb.mxu2 %v2693_v59  ;;  %v2904_v59 = vld [vmem:[#allocation4 + $0x240] sm:$0xf] }
  0xc6   :  { %v2905_v62 = vor.u32 %v3330_v60, %v2904_v59  ;;  %v3355_v59 = vld [vmem:[#allocation4 + $0x324] sm:$0xf0]  ;;  %v3351_v60 = vld [vmem:[#allocation4 + $0x30c] sm:$0xf] }
  0xc7   :  { %1898 = vmatpush.bf16.msrb.mxu0 %v2657_v0  ;;  %v2909_v0 = vor.u32 %v3326_v40, %v2906_v61  ;;  %v3010_v40 = vld [vmem:[#allocation4 + $0x328] sm:$0xf0]  ;;  %v2761_v61 = vor.u32 %v3292_v52, %v2760_v51  ;;  %v2633_v52 = vor.u32 %v3260_v37, %v2632_v34  ;;  %v3273_v34 = vld [vmem:[#allocation4 + $0x9c] sm:$0xf] }
  0xc8   :  { %1859 = vmatpush.bf16.msra.mxu1 %v2905_v62  ;;  %v2728_v62 = vld [vmem:[#allocation4 + $0xd0] sm:$0xf]  ;;  %v3013_v2 = vor.u32 %v3351_v60, %v3010_v40  ;;  %v2832_v40 = vld [vmem:[#allocation4 + $0x198] sm:$0xf]  ;;  %v2706_v37 = vld [vmem:[#allocation4 + $0xb8] sm:$0xf0] }
  0xc9   :  { %1924 = vmatpush.bf16.msrb.mxu2 %v2661_v4  ;;  %1885 = vmatpush.bf16.msra.mxu3 %v2909_v0  ;;  %v2730_v0 = vld [vmem:[#allocation4 + $0xf0] sm:$0xf0] }
  0xcb   :  { %1899 = vmatpush.bf16.msrb.mxu0 %v2625_v19  ;;  %v903_v50 = vpop.f32.mrf.mxu0  ;;  %v2857_v19 = vor.u32 %v3316_v8, %v2856_v1 }
  0xcc   :  { %v904_v53 = vadd.f32 %v903_v50, %v891_v46  ;;  %v916_v54 = vpop.f32.mrf.mxu1  ;;  %1860 = vmatpush.bf16.msra.mxu1 %v2873_v13  ;;  %v3040_v46 = vld [vmem:[#allocation4 + $0x348] sm:$0xf]  ;;  %v2797_v50 = vor.u32 %v3296_v44, %v2794_v45  ;;  %v3272_v13 = vld [vmem:[#allocation4 + $0x94] sm:$0xf]  ;;  %v3327_v44 = vld [vmem:[#allocation4 + $0x24c] sm:$0xf] }
  0xcd   :  { %1925 = vmatpush.bf16.msrb.mxu2 %v2629_v23  ;;  %v3375_v23 = vld [vmem:[#allocation4 + $0x3cc] sm:$0xf]  ;;  %1886 = vmatpush.bf16.msra.mxu3 %v2877_v27  ;;  %v3041_v55 = vor.u32 %v3363_v7, %v3040_v46  ;;  %v2701_v22 = vor.u32 %v3272_v13, %v2698_v14  ;;  %v2913_v46 = vor.u32 %v3331_v43, %v2912_v42 }
  0xce   :  { %v917_v35 = vadd.f32 %v916_v54, %v904_v53  ;;  %v3109_v32 = vor.u32 %v3375_v23, %v3106_v29  ;;  %v3288_v53 = vld [vmem:[#allocation4 + $0x114] sm:$0xf]  ;;  %v3335_v27 = vld [vmem:[#allocation4 + $0x28c] sm:$0xf]  ;;  %v2709_v43 = vor.u32 %v3273_v34, %v2706_v37 }
  0xcf   :  { %v2762_v54 = vld [vmem:[#allocation4 + $0x130] sm:$0xf0]  ;;  %v2914_v7 = vld [vmem:[#allocation4 + $0x268] sm:$0xf0] }
  0xd0   :  { %1905 = vmatpush.bf16.msrb.mxu1 %v3105_v28  ;;  %v3264_v28 = vld [vmem:[#allocation4 + $0x54] sm:$0xf] }
  0xd1   :  { %1931 = vmatpush.bf16.msrb.mxu3 %v3109_v32  ;;  %v2666_v29 = vld [vmem:[#allocation4 + $0x70] sm:$0xf0]  ;;  %v2946_v32 = vld [vmem:[#allocation4 + $0x2a8] sm:$0xf0] }
  0xd2   :  { %v2954_v34 = vld [vmem:[#allocation4 + $0x2b0] sm:$0xf0] }
  0xd3   :  { %v929_v31 = vpop.f32.mrf.mxu2  ;;  %v905_v11 = vpop.f32.mrf.mxu0 }
  0xd4   :  { %v930_v36 = vadd.f32 %v929_v31, %v917_v35  ;;  %v942_v63 = vpop.f32.mrf.mxu3  ;;  %v918_v12 = vpop.f32.mrf.mxu1  ;;  %1906 = vmatpush.bf16.msrb.mxu1 %v3073_v5  ;;  %v3008_v35 = vld [vmem:[#allocation4 + $0x308] sm:$0xf]  ;;  %v2765_v31 = vor.u32 %v3288_v53, %v2762_v54  ;;  %v2634_v5 = vld [vmem:[#allocation4 + $0x30] sm:$0xf0] }
  0xd5   :  { %1932 = vmatpush.bf16.msrb.mxu3 %v3077_v6  ;;  %v3009_v1 = vor.u32 %v3355_v59, %v3008_v35  ;;  %v3347_v11 = vld [vmem:[#allocation4 + $0x2e4] sm:$0xf0]  ;;  %v3343_v12 = vld [vmem:[#allocation4 + $0x2cc] sm:$0xf]  ;;  %v2864_v6 = vld [vmem:[#allocation4 + $0x1d8] sm:$0xf]  ;;  %v2637_v53 = vor.u32 %v3256_v38, %v2634_v5 }
  0xd6   :  { %v943_v4 = vadd.f32 %v942_v63, %v930_v36  ;;  %v3284_v36 = vld [vmem:[#allocation4 + $0xec] sm:$0xf0]  ;;  %v3280_v63 = vld [vmem:[#allocation4 + $0xd4] sm:$0xf]  ;;  %v2977_v15 = vor.u32 %v3347_v11, %v2976_v10  ;;  %v3319_v35 = vld [vmem:[#allocation4 + $0x20c] sm:$0xf]  ;;  %v2865_v59 = vor.u32 %v3317_v47, %v2864_v6 }
  0xd7   :  { %v2729_v8 = vor.u32 %v3284_v36, %v2728_v62  ;;  %v2733_v9 = vor.u32 %v3280_v63, %v2730_v0  ;;  %v3305_v62 = vld [vmem:[#allocation4 + $0x19c] sm:$0xf]  ;;  %v3301_v10 = vld [vmem:[#allocation4 + $0x174] sm:$0xf0] }
  0xd8   :  { %v1050_v16 = vmax.f32 %v943_v4, 0.0  ;;  %1907 = vmatpush.bf16.msrb.mxu1 %v3041_v55  ;;  %v3276_v4 = vld [vmem:[#allocation4 + $0xac] sm:$0xf0]  ;;  %v2880_v55 = vld [vmem:[#allocation4 + $0x208] sm:$0xf] }
  0xd9   :  { %1933 = vmatpush.bf16.msrb.mxu3 %v3045_v56  ;;  %v2697_v21 = vor.u32 %v3276_v4, %v2696_v3  ;;  %v3323_v56 = vld [vmem:[#allocation4 + $0x224] sm:$0xf0]  ;;  %v2834_v36 = vld [vmem:[#allocation4 + $0x1b8] sm:$0xf0]  ;;  %v3269_v5 = vld [vmem:[#allocation4 + $0x74] sm:$0xf0] }
  0xda   :  { %v3576_v24 = vpack.c.bf16 %v1050_v16, %v1050_v16  ;;  %v2978_v16 = vld [vmem:[#allocation4 + $0x2e8] sm:$0xf0]  ;;  %v2881_v63 = vor.u32 %v3323_v56, %v2880_v55  ;;  %v2837_v4 = vor.u32 %v3305_v62, %v2834_v36  ;;  %v3297_v11 = vld [vmem:[#allocation4 + $0x15c] sm:$0xf]  ;;  %v3112_v56 = vld [vmem:[#allocation4 + $0x3d0] sm:$0xf] }
  0xdb   :  { %v931_v30 = vpop.f32.mrf.mxu2  ;;  %v2981_v17 = vor.u32 %v3343_v12, %v2978_v16  ;;  %v2802_v12 = vld [vmem:[#allocation4 + $0x178] sm:$0xf0]  ;;  %v3293_v16 = vld [vmem:[#allocation4 + $0x134] sm:$0xf0] }
  0xdc   :  { %1848 = vmatmul.bf16.vlgmr.msra.gmra.mxu0 %v3576_v24  ;;  %1874 = vmatmul.bf16.vlgmr.msra.gmra.mxu2 %v3576_v24  ;;  %v944_v33 = vpop.f32.mrf.mxu3  ;;  %v2945_v30 = vor.u32 %v3339_v26, %v2944_v25  ;;  %v2805_v14 = vor.u32 %v3297_v11, %v2802_v12  ;;  %v2736_v25 = vld [vmem:[#allocation4 + $0xd8] sm:$0xf]  ;;  %v3281_v26 = vld [vmem:[#allocation4 + $0xdc] sm:$0xf]  ;;  %v3048_v12 = vld [vmem:[#allocation4 + $0x350] sm:$0xf] }
  0xdd   :  { %1944 = vmatpush.bf16.msra.mxu0 %v2857_v19  ;;  %1970 = vmatpush.bf16.msra.mxu2 %v2861_v20  ;;  %v2664_v19 = vld [vmem:[#allocation4 + $0x50] sm:$0xf]  ;;  %v2949_v33 = vor.u32 %v3335_v27, %v2946_v32  ;;  %v2738_v27 = vld [vmem:[#allocation4 + $0xf8] sm:$0xf0]  ;;  %v2704_v32 = vld [vmem:[#allocation4 + $0x98] sm:$0xf] }
  0xde   :  { %1908 = vmatpush.bf16.msrb.mxu1 %v3009_v1  ;;  %1934 = vmatpush.bf16.msrb.mxu3 %v3013_v2  ;;  %v3268_v20 = vld [vmem:[#allocation4 + $0x6c] sm:$0xf0]  ;;  %v199_v1 = vperm.slane %v3573_v58, 1  ;;  %v2674_v6 = vld [vmem:[#allocation4 + $0x78] sm:$0xf0] }
  0xe1   :  { %1945 = vmatpush.bf16.msra.mxu0 %v2825_v39  ;;  %1971 = vmatpush.bf16.msra.mxu2 %v2829_v57  ;;  %v2665_v39 = vor.u32 %v3268_v20, %v2664_v19  ;;  %v2669_v57 = vor.u32 %v3264_v28, %v2666_v29  ;;  %v2770_v19 = vld [vmem:[#allocation4 + $0x138] sm:$0xf0] }
  0xe2   :  { %1909 = vmatpush.bf16.msrb.mxu1 %v2977_v15  ;;  %1935 = vmatpush.bf16.msrb.mxu3 %v2981_v17  ;;  %v2768_v15 = vld [vmem:[#allocation4 + $0x118] sm:$0xf]  ;;  %v3289_v17 = vld [vmem:[#allocation4 + $0x11c] sm:$0xf] }
  0xe5   :  { %1946 = vmatpush.bf16.msra.mxu0 %v2793_v49  ;;  %1972 = vmatpush.bf16.msra.mxu2 %v2797_v50  ;;  %v2866_v49 = vld [vmem:[#allocation4 + $0x1f8] sm:$0xf0]  ;;  %v2917_v50 = vor.u32 %v3327_v44, %v2914_v7  ;;  %v2672_v44 = vld [vmem:[#allocation4 + $0x58] sm:$0xf] }
  0xe6   :  { %1910 = vmatpush.bf16.msrb.mxu1 %v2945_v30  ;;  %1936 = vmatpush.bf16.msrb.mxu3 %v2949_v33  ;;  %v2869_v60 = vor.u32 %v3313_v48, %v2866_v49  ;;  %v2741_v30 = vor.u32 %v3281_v26, %v2738_v27  ;;  %v3277_v33 = vld [vmem:[#allocation4 + $0xb4] sm:$0xf0]  ;;  %v2673_v7 = vor.u32 %v3269_v5, %v2672_v44  ;;  %v3348_v26 = vld [vmem:[#allocation4 + $0x2ec] sm:$0xf0]  ;;  %v3344_v27 = vld [vmem:[#allocation4 + $0x2d4] sm:$0xf] }
  0xe7   :  { %v2705_v42 = vor.u32 %v3277_v33, %v2704_v32  ;;  %v2640_v48 = vld [vmem:[#allocation4 + $0x18] sm:$0xf]  ;;  %v3340_v32 = vld [vmem:[#allocation4 + $0x2ac] sm:$0xf0]  ;;  %v3336_v33 = vld [vmem:[#allocation4 + $0x294] sm:$0xf] }
  0xe8   :  { %v2888_v5 = vld [vmem:[#allocation4 + $0x210] sm:$0xf] }
  0xe9   :  { %1947 = vmatpush.bf16.msra.mxu0 %v2761_v61  ;;  %1973 = vmatpush.bf16.msra.mxu2 %v2765_v31  ;;  %v2882_v61 = vld [vmem:[#allocation4 + $0x228] sm:$0xf0]  ;;  %v3309_v31 = vld [vmem:[#allocation4 + $0x1b4] sm:$0xf0] }
  0xea   :  { %1911 = vmatpush.bf16.msrb.mxu1 %v2913_v46  ;;  %1937 = vmatpush.bf16.msrb.mxu3 %v2917_v50  ;;  %v2885_v0 = vor.u32 %v3319_v35, %v2882_v61  ;;  %v2833_v3 = vor.u32 %v3309_v31, %v2832_v40  ;;  %v3261_v50 = vld [vmem:[#allocation4 + $0x34] sm:$0xf0]  ;;  %v3380_v40 = vld [vmem:[#allocation4 + $0x3ec] sm:$0xf0]  ;;  %v3376_v61 = vld [vmem:[#allocation4 + $0x3d4] sm:$0xf] }
  0xeb   :  { %v3582_v18 = vpop.f32.mrf.mxu0  ;;  %v3114_v31 = vld [vmem:[#allocation4 + $0x3f0] sm:$0xf0]  ;;  %v3113_v36 = vor.u32 %v3380_v40, %v3112_v56  ;;  %v3090_v56 = vld [vmem:[#allocation4 + $0x3b8] sm:$0xf0]  ;;  %v3365_v40 = vld [vmem:[#allocation4 + $0x374] sm:$0xf0] }
  0xec   :  { %1900 = vmatmul.bf16.vlgmr.msrb.gmra.mxu0 %v3576_v24  ;;  %1926 = vmatmul.bf16.vlgmr.msrb.gmra.mxu2 %v3576_v24  ;;  %v3584_v23 = vpop.f32.mrf.mxu1  ;;  %v956_v13 = vadd.f32 %v3582_v18, %v199_v1  ;;  %v3285_v18 = vld [vmem:[#allocation4 + $0xf4] sm:$0xf0] }
  0xed   :  { %1948 = vmatpush.bf16.msra.mxu0 %v2729_v8  ;;  %1974 = vmatpush.bf16.msra.mxu2 %v2733_v9  ;;  %v2800_v9 = vld [vmem:[#allocation4 + $0x158] sm:$0xf]  ;;  %v2737_v29 = vor.u32 %v3285_v18, %v2736_v25  ;;  %v2984_v18 = vld [vmem:[#allocation4 + $0x2d0] sm:$0xf] }
  0xee   :  { %1912 = vmatpush.bf16.msrb.mxu1 %v2881_v63  ;;  %1938 = vmatpush.bf16.msrb.mxu3 %v2885_v0  ;;  %v2801_v58 = vor.u32 %v3301_v10, %v2800_v9  ;;  %v969_v20 = vadd.f32 %v3584_v23, %v956_v13  ;;  %v3117_v63 = vor.u32 %v3376_v61, %v3114_v31  ;;  %v3080_v0 = vld [vmem:[#allocation4 + $0x390] sm:$0xf]  ;;  %v3361_v61 = vld [vmem:[#allocation4 + $0x35c] sm:$0xf] }
  0xef   :  { %v3364_v13 = vld [vmem:[#allocation4 + $0x36c] sm:$0xf0]  ;;  %v3058_v31 = vld [vmem:[#allocation4 + $0x378] sm:$0xf0] }
  0xf1   :  { %1949 = vmatpush.bf16.msra.mxu0 %v2697_v21  ;;  %1975 = vmatpush.bf16.msra.mxu2 %v2701_v22  ;;  %v2769_v21 = vor.u32 %v3293_v16, %v2768_v15  ;;  %v2773_v22 = vor.u32 %v3289_v17, %v2770_v19  ;;  %v3049_v15 = vor.u32 %v3364_v13, %v3048_v12  ;;  %v3016_v17 = vld [vmem:[#allocation4 + $0x310] sm:$0xf]  ;;  %v2994_v12 = vld [vmem:[#allocation4 + $0x2f8] sm:$0xf0] }
  0xf2   :  { %v3356_v19 = vld [vmem:[#allocation4 + $0x32c] sm:$0xf0] }
  0xf3   :  { %v3586_v41 = vpop.f32.mrf.mxu2  ;;  %v957_v51 = vpop.f32.mrf.mxu0 }
  0xf4   :  { %v3588_v45 = vpop.f32.mrf.mxu3  ;;  %v970_v54 = vpop.f32.mrf.mxu1  ;;  %v982_v28 = vadd.f32 %v3586_v41, %v969_v20  ;;  %v3265_v41 = vld [vmem:[#allocation4 + $0x5c] sm:$0xf]  ;;  %v3352_v20 = vld [vmem:[#allocation4 + $0x314] sm:$0xf] }
  0xf5   :  { %1950 = vmatpush.bf16.msra.mxu0 %v2665_v39  ;;  %1976 = vmatpush.bf16.msra.mxu2 %v2669_v57  ;;  %v2677_v47 = vor.u32 %v3265_v41, %v2674_v6  ;;  %v2642_v51 = vld [vmem:[#allocation4 + $0x38] sm:$0xf0]  ;;  %v3324_v41 = vld [vmem:[#allocation4 + $0x22c] sm:$0xf0]  ;;  %v3320_v6 = vld [vmem:[#allocation4 + $0x214] sm:$0xf] }
  0xf6   :  { %v995_v23 = vadd.f32 %v3588_v45, %v982_v28  ;;  %v3257_v45 = vld [vmem:[#allocation4 + $0x1c] sm:$0xf]  ;;  %v2986_v28 = vld [vmem:[#allocation4 + $0x2f0] sm:$0xf0] }
  0xf9   :  { %1951 = vmatpush.bf16.msra.mxu0 %v2633_v52  ;;  %1977 = vmatpush.bf16.msra.mxu2 %v2637_v53 }
  0xfb   :  { %v983_v2 = vpop.f32.mrf.mxu2 }
  0xfc   :  { %v996_v8 = vpop.f32.mrf.mxu3  ;;  %1952 = vmatmul.bf16.vlgmr.msra.gmra.mxu0 %v3576_v24  ;;  %1978 = vmatmul.bf16.vlgmr.msra.gmra.mxu2 %v3576_v24  ;;  %v3372_v2 = vld [vmem:[#allocation4 + $0x3ac] sm:$0xf0] }
  0xfd   :  { %1996 = vmatpush.bf16.msrb.mxu0 %v2865_v59  ;;  %2022 = vmatpush.bf16.msrb.mxu2 %v2869_v60  ;;  %v2641_v59 = vor.u32 %v3261_v50, %v2640_v48  ;;  %v2645_v60 = vor.u32 %v3257_v45, %v2642_v51  ;;  %v3081_v10 = vor.u32 %v3372_v2, %v3080_v0  ;;  %v3377_v48 = vld [vmem:[#allocation4 + $0x3dc] sm:$0xf]  ;;  %v3357_v0 = vld [vmem:[#allocation4 + $0x334] sm:$0xf0] }
  0xfe   :  { %v2889_v50 = vor.u32 %v3324_v41, %v2888_v5  ;;  %v3353_v2 = vld [vmem:[#allocation4 + $0x31c] sm:$0xf] }
 0x101   :  { %1997 = vmatpush.bf16.msrb.mxu0 %v2833_v3  ;;  %2023 = vmatpush.bf16.msrb.mxu2 %v2837_v4  ;;  %v3368_v3 = vld [vmem:[#allocation4 + $0x394] sm:$0xf] }
 0x102   :  { %v3082_v4 = vld [vmem:[#allocation4 + $0x3b0] sm:$0xf0] }
 0x103   :  { %v3085_v11 = vor.u32 %v3368_v3, %v3082_v4  ;;  %v3026_v3 = vld [vmem:[#allocation4 + $0x338] sm:$0xf0] }
 0x105   :  { %1998 = vmatpush.bf16.msrb.mxu0 %v2801_v58  ;;  %2024 = vmatpush.bf16.msrb.mxu2 %v2805_v14  ;;  %v3360_v58 = vld [vmem:[#allocation4 + $0x354] sm:$0xf] }
 0x106   :  { %v3050_v14 = vld [vmem:[#allocation4 + $0x370] sm:$0xf0] }
 0x107   :  { %v3053_v16 = vor.u32 %v3360_v58, %v3050_v14  ;;  %v2960_v14 = vld [vmem:[#allocation4 + $0x298] sm:$0xf] }
 0x109   :  { %1999 = vmatpush.bf16.msrb.mxu0 %v2769_v21  ;;  %2025 = vmatpush.bf16.msrb.mxu2 %v2773_v22  ;;  %v3018_v21 = vld [vmem:[#allocation4 + $0x330] sm:$0xf0]  ;;  %v3017_v22 = vor.u32 %v3356_v19, %v3016_v17  ;;  %v2962_v17 = vld [vmem:[#allocation4 + $0x2b8] sm:$0xf0] }
 0x10a   :  { %v3021_v25 = vor.u32 %v3352_v20, %v3018_v21  ;;  %v2928_v21 = vld [vmem:[#allocation4 + $0x258] sm:$0xf] }
 0x10b   :  { %v1007_v38 = vpop.f32.mrf.mxu0 }
 0x10c   :  { %v1020_v39 = vpop.f32.mrf.mxu1  ;;  %v1008_v57 = vadd.f32 %v1007_v38, %v995_v23  ;;  %v2957_v23 = vor.u32 %v3336_v33, %v2954_v34  ;;  %v2920_v38 = vld [vmem:[#allocation4 + $0x250] sm:$0xf] }
 0x10d   :  { %2000 = vmatpush.bf16.msrb.mxu0 %v2737_v29  ;;  %2026 = vmatpush.bf16.msrb.mxu2 %v2741_v30  ;;  %v2989_v29 = vor.u32 %v3344_v27, %v2986_v28  ;;  %v2952_v30 = vld [vmem:[#allocation4 + $0x290] sm:$0xf]  ;;  %v2896_v28 = vld [vmem:[#allocation4 + $0x218] sm:$0xf] }
 0x10e   :  { %v1021_v46 = vadd.f32 %v1020_v39, %v1008_v57  ;;  %v2953_v37 = vor.u32 %v3340_v32, %v2952_v30  ;;  %v3332_v39 = vld [vmem:[#allocation4 + $0x26c] sm:$0xf0]  ;;  %v3328_v57 = vld [vmem:[#allocation4 + $0x254] sm:$0xf]  ;;  %v2898_v30 = vld [vmem:[#allocation4 + $0x238] sm:$0xf0] }
 0x111   :  { %2001 = vmatpush.bf16.msrb.mxu0 %v2705_v42  ;;  %2027 = vmatpush.bf16.msrb.mxu2 %v2709_v43  ;;  %v2922_v42 = vld [vmem:[#allocation4 + $0x270] sm:$0xf0]  ;;  %v2921_v43 = vor.u32 %v3332_v39, %v2920_v38 }
 0x112   :  { %v2925_v44 = vor.u32 %v3328_v57, %v2922_v42 }
 0x113   :  { %v1033_v49 = vpop.f32.mrf.mxu2  ;;  %v1009_v54 = vpop.f32.mrf.mxu0 }
 0x114   :  { %v1034_v52 = vadd.f32 %v1033_v49, %v1021_v46  ;;  %v1046_v53 = vpop.f32.mrf.mxu3  ;;  %v1022_v55 = vpop.f32.mrf.mxu1  ;;  %v2890_v46 = vld [vmem:[#allocation4 + $0x230] sm:$0xf0]  ;;  %v3122_v49 = vld [vmem:[#allocation4 + $0x3f8] sm:$0xf0]  ;;  %v3373_v54 = vld [vmem:[#allocation4 + $0x3b4] sm:$0xf0] }
 0x115   :  { %2002 = vmatpush.bf16.msrb.mxu0 %v2673_v7  ;;  %2028 = vmatpush.bf16.msrb.mxu2 %v2677_v47  ;;  %v3120_v7 = vld [vmem:[#allocation4 + $0x3d8] sm:$0xf]  ;;  %v2893_v45 = vor.u32 %v3320_v6, %v2890_v46  ;;  %v3369_v55 = vld [vmem:[#allocation4 + $0x39c] sm:$0xf]  ;;  %v3612_v46 = vld [vmem:[%s3656_s4] sm:$0xff] }
 0x116   :  { %v1047_v35 = vadd.f32 %v1046_v53, %v1034_v52  ;;  %v3381_v47 = vld [vmem:[#allocation4 + $0x3f4] sm:$0xf0]  ;;  %v3125_v52 = vor.u32 %v3377_v48, %v3122_v49  ;;  %v1185_v48 = vperm.slane %v3612_v46, 1 }
 0x117   :  { %v3121_v51 = vor.u32 %v3381_v47, %v3120_v7  ;;  %v3088_v53 = vld [vmem:[#allocation4 + $0x398] sm:$0xf]  ;;  %v1184_v7 = vperm.slane %v3612_v46, 0 }
 0x118   :  { %v1051_v62 = vmax.f32 %v1047_v35, 0.0  ;;  %v3089_v35 = vor.u32 %v3373_v54, %v3088_v53 }
 0x119   :  { %2003 = vmatpush.bf16.msrb.mxu0 %v2641_v59  ;;  %2029 = vmatpush.bf16.msrb.mxu2 %v2645_v60  ;;  %v3093_v59 = vor.u32 %v3369_v55, %v3090_v56  ;;  %v3056_v60 = vld [vmem:[#allocation4 + $0x358] sm:$0xf] }
 0x11a   :  { %v3597_v1 = vpack.c.bf16 %v1051_v62, %v1051_v62  ;;  %v3057_v62 = vor.u32 %v3365_v40, %v3056_v60  ;;  %v1186_v60 = vperm.slane %v3612_v46, 2 }
 0x11b   :  { %v1035_v8 = vpop.f32.mrf.mxu2 }
 0x11c   :  { %v1048_v9 = vpop.f32.mrf.mxu3  ;;  %1861 = vmatmul.bf16.vlgmr.msra.gmra.mxu1 %v3597_v1  ;;  %1887 = vmatmul.bf16.vlgmr.msra.gmra.mxu3 %v3597_v1  ;;  %v3029_v8 = vor.u32 %v3353_v2, %v3026_v3  ;;  %v1187_v2 = vperm.slane %v3612_v46, 3 }
 0x11d   :  { %1957 = vmatpush.bf16.msra.mxu1 %v3113_v36  ;;  %1983 = vmatpush.bf16.msra.mxu3 %v3117_v63  ;;  %v3061_v36 = vor.u32 %v3361_v61, %v3058_v31  ;;  %v3024_v63 = vld [vmem:[#allocation4 + $0x318] sm:$0xf] }
 0x11e   :  { %2004 = vmatmul.bf16.vlgmr.msrb.gmra.mxu0 %v3576_v24  ;;  %2030 = vmatmul.bf16.vlgmr.msrb.gmra.mxu2 %v3576_v24  ;;  %v2985_v24 = vor.u32 %v3348_v26, %v2984_v18  ;;  %v3025_v4 = vor.u32 %v3357_v0, %v3024_v63  ;;  %v2992_v9 = vld [vmem:[#allocation4 + $0x2d8] sm:$0xf]  ;;  %v2930_v18 = vld [vmem:[#allocation4 + $0x278] sm:$0xf0] }
 0x121   :  { %1958 = vmatpush.bf16.msra.mxu1 %v3081_v10  ;;  %1984 = vmatpush.bf16.msra.mxu3 %v3085_v11  ;;  %v3349_v10 = vld [vmem:[#allocation4 + $0x2f4] sm:$0xf0]  ;;  %v3345_v11 = vld [vmem:[#allocation4 + $0x2dc] sm:$0xf] }
 0x122   :  { %v2993_v13 = vor.u32 %v3349_v10, %v2992_v9  ;;  %v2997_v58 = vor.u32 %v3345_v11, %v2994_v12 }
 0x125   :  { %1959 = vmatpush.bf16.msra.mxu1 %v3049_v15  ;;  %1985 = vmatpush.bf16.msra.mxu3 %v3053_v16  ;;  %v3341_v15 = vld [vmem:[#allocation4 + $0x2b4] sm:$0xf0]  ;;  %v3337_v16 = vld [vmem:[#allocation4 + $0x29c] sm:$0xf] }
 0x126   :  { %v2961_v19 = vor.u32 %v3341_v15, %v2960_v14  ;;  %v2965_v20 = vor.u32 %v3337_v16, %v2962_v17  ;;  %v1188_v16 = vperm.slane %v3612_v46, 4 }
 0x129   :  { %1960 = vmatpush.bf16.msra.mxu1 %v3017_v22  ;;  %1986 = vmatpush.bf16.msra.mxu3 %v3021_v25  ;;  %v3333_v22 = vld [vmem:[#allocation4 + $0x274] sm:$0xf0]  ;;  %v3329_v25 = vld [vmem:[#allocation4 + $0x25c] sm:$0xf] }
 0x12a   :  { %v2929_v26 = vor.u32 %v3333_v22, %v2928_v21  ;;  %v2933_v27 = vor.u32 %v3329_v25, %v2930_v18 }
 0x12c   :  { %1913 = vmatmul.bf16.vlgmr.msrb.gmra.mxu1 %v3597_v1  ;;  %1939 = vmatmul.bf16.vlgmr.msrb.gmra.mxu3 %v3597_v1 }
 0x12d   :  { %1961 = vmatpush.bf16.msra.mxu1 %v2985_v24  ;;  %1987 = vmatpush.bf16.msra.mxu3 %v2989_v29  ;;  %v3325_v24 = vld [vmem:[#allocation4 + $0x234] sm:$0xf0]  ;;  %v3321_v29 = vld [vmem:[#allocation4 + $0x21c] sm:$0xf] }
 0x12e   :  { %v2897_v32 = vor.u32 %v3325_v24, %v2896_v28  ;;  %v2901_v33 = vor.u32 %v3321_v29, %v2898_v30 }
 0x131   :  { %1962 = vmatpush.bf16.msra.mxu1 %v2953_v37  ;;  %1988 = vmatpush.bf16.msra.mxu3 %v2957_v23 }
 0x135   :  { %1963 = vmatpush.bf16.msra.mxu1 %v2921_v43  ;;  %1989 = vmatpush.bf16.msra.mxu3 %v2925_v44 }
 0x139   :  { %1964 = vmatpush.bf16.msra.mxu1 %v2889_v50  ;;  %1990 = vmatpush.bf16.msra.mxu3 %v2893_v45 }
 0x13c   :  { %1965 = vmatmul.bf16.vlgmr.msra.gmra.mxu1 %v3597_v1  ;;  %1991 = vmatmul.bf16.vlgmr.msra.gmra.mxu3 %v3597_v1 }
 0x13d   :  { %2009 = vmatpush.bf16.msrb.mxu1 %v3121_v51  ;;  %2035 = vmatpush.bf16.msrb.mxu3 %v3125_v52 }
 0x141   :  { %2010 = vmatpush.bf16.msrb.mxu1 %v3089_v35  ;;  %2036 = vmatpush.bf16.msrb.mxu3 %v3093_v59 }
 0x145   :  { %2011 = vmatpush.bf16.msrb.mxu1 %v3057_v62  ;;  %2037 = vmatpush.bf16.msrb.mxu3 %v3061_v36 }
 0x149   :  { %2012 = vmatpush.bf16.msrb.mxu1 %v3025_v4  ;;  %2038 = vmatpush.bf16.msrb.mxu3 %v3029_v8 }
 0x14d   :  { %2013 = vmatpush.bf16.msrb.mxu1 %v2993_v13  ;;  %2039 = vmatpush.bf16.msrb.mxu3 %v2997_v58 }
 0x151   :  { %2014 = vmatpush.bf16.msrb.mxu1 %v2961_v19  ;;  %2040 = vmatpush.bf16.msrb.mxu3 %v2965_v20 }
 0x155   :  { %2015 = vmatpush.bf16.msrb.mxu1 %v2929_v26  ;;  %2041 = vmatpush.bf16.msrb.mxu3 %v2933_v27  ;;  %v1189_v26 = vperm.slane %v3612_v46, 5 }
 0x159   :  { %2016 = vmatpush.bf16.msrb.mxu1 %v2897_v32  ;;  %2042 = vmatpush.bf16.msrb.mxu3 %v2901_v33  ;;  %v1849_v34 = vpop.f32.mrf.mxu0 }
 0x15c   :  { %2017 = vmatmul.bf16.vlgmr.msrb.gmra.mxu1 %v3597_v1  ;;  %2043 = vmatmul.bf16.vlgmr.msrb.gmra.mxu3 %v3597_v1  ;;  %v1850_v1 = vadd.f32 %v1849_v34, %v1184_v7  ;;  %v1190_v7 = vperm.slane %v3612_v46, 6 }
 0x15f   :  { %v1875_v37 = vpop.f32.mrf.mxu2 }
 0x160   :  { %v1876_v51 = vadd.f32 %v1875_v37, %v1185_v48 }
 0x161   :  { %v1851_v23 = vpop.f32.mrf.mxu0 }
 0x167   :  { %v1877_v38 = vpop.f32.mrf.mxu2 }
 0x169   :  { %v1901_v39 = vpop.f32.mrf.mxu0 }
 0x16a   :  { %v1902_v36 = vadd.f32 %v1901_v39, %v1186_v60 }
 0x16f   :  { %v1927_v57 = vpop.f32.mrf.mxu2 }
 0x170   :  { %v1928_v10 = vadd.f32 %v1927_v57, %v1187_v2 }
 0x171   :  { %v1903_v42 = vpop.f32.mrf.mxu0 }
 0x177   :  { %v1929_v43 = vpop.f32.mrf.mxu2 }
 0x179   :  { %v1953_v44 = vpop.f32.mrf.mxu0 }
 0x17a   :  { %v1954_v25 = vadd.f32 %v1953_v44, %v1188_v16 }
 0x17f   :  { %v1979_v5 = vpop.f32.mrf.mxu2 }
 0x180   :  { %v1980_v30 = vadd.f32 %v1979_v5, %v1189_v26 }
 0x181   :  { %v1955_v41 = vpop.f32.mrf.mxu0 }
 0x187   :  { %v1981_v6 = vpop.f32.mrf.mxu2 }
 0x199   :  { %v1862_v47 = vpop.f32.mrf.mxu1 }
 0x19a   :  { %v1863_v49 = vadd.f32 %v1862_v47, %v1850_v1 }
 0x19b   :  { %v3616_v50 = vpop.f32.mrf.mxu0 }
 0x19c   :  { %v2048_v45 = vsub.f32 0.0, %v1863_v49  ;;  %v2006_v47 = vadd.f32 %v3616_v50, %v1190_v7  ;;  %v1191_v49 = vperm.slane %v3612_v46, 7 }
 0x19e   :  { %v2056_v52 = vmul.f32 1.442695, %v2048_v45 }
 0x19f   :  { %v1888_v53 = vpop.f32.mrf.mxu3 }
 0x1a0   :  { %3388 = vpow2.f32 %v2056_v52  ;;  %v1889_v54 = vadd.f32 %v1888_v53, %v1876_v51 }
 0x1a1   :  { %v1864_v55 = vpop.f32.mrf.mxu1  ;;  %v3618_v56 = vpop.f32.mrf.mxu2 }
 0x1a2   :  { %v2049_v35 = vsub.f32 0.0, %v1889_v54  ;;  %v2032_v52 = vadd.f32 %v3618_v56, %v1191_v49 }
 0x1a3   :  { %v2007_v59 = vpop.f32.mrf.mxu0 }
 0x1a4   :  { %v2058_v40 = vmul.f32 1.442695, %v2049_v35 }
 0x1a6   :  { %v3389_v61 = vpop.eup %3388  ;;  %3390 = vpow2.f32 %v2058_v40 }
 0x1a7   :  { %v2072_v31 = vadd.f32 1.0, %v3389_v61  ;;  %v1890_v62 = vpop.f32.mrf.mxu3 }
 0x1a9   :  { %3392 = vrcp.f32 %v2072_v31  ;;  %v1914_v63 = vpop.f32.mrf.mxu1  ;;  %v2033_v0 = vpop.f32.mrf.mxu2 }
 0x1aa   :  { %v1915_v3 = vadd.f32 %v1914_v63, %v1902_v36 }
 0x1ac   :  { %v3391_v4 = vpop.eup %3390  ;;  %v2050_v8 = vsub.f32 0.0, %v1915_v3 }
 0x1ad   :  { %v2073_v9 = vadd.f32 1.0, %v3391_v4 }
 0x1ae   :  { %v2060_v11 = vmul.f32 1.442695, %v2050_v8 }
 0x1af   :  { %v3393_v12 = vpop.eup %3392  ;;  %3394 = vrcp.f32 %v2073_v9  ;;  %v1940_v13 = vpop.f32.mrf.mxu3 }
 0x1b0   :  { %2088 = vst [vmem:[%s3657_s5] sm:$0xff] %v3393_v12  ;;  %3396 = vpow2.f32 %v2060_v11  ;;  %v1941_v58 = vadd.f32 %v1940_v13, %v1928_v10 }
 0x1b1   :  { %v1916_v14 = vpop.f32.mrf.mxu1 }
 0x1b2   :  { %v2051_v15 = vsub.f32 0.0, %v1941_v58 }
 0x1b4   :  { %v2062_v17 = vmul.f32 1.442695, %v2051_v15 }
 0x1b5   :  { %v3395_v19 = vpop.eup %3394 }
 0x1b6   :  { %v3397_v20 = vpop.eup %3396  ;;  %2089 = vst [vmem:[%s3657_s5 + $0x8] sm:$0xff] %v3395_v19  ;;  %3398 = vpow2.f32 %v2062_v17 }
 0x1b7   :  { %v2074_v21 = vadd.f32 1.0, %v3397_v20  ;;  %v1942_v22 = vpop.f32.mrf.mxu3 }
 0x1b9   :  { %3400 = vrcp.f32 %v2074_v21  ;;  %v1966_v18 = vpop.f32.mrf.mxu1 }
 0x1ba   :  { %v1967_v27 = vadd.f32 %v1966_v18, %v1954_v25 }
 0x1bc   :  { %v3399_v28 = vpop.eup %3398  ;;  %v2052_v24 = vsub.f32 0.0, %v1967_v27 }
 0x1bd   :  { %v2075_v29 = vadd.f32 1.0, %v3399_v28 }
 0x1be   :  { %v2064_v32 = vmul.f32 1.442695, %v2052_v24 }
 0x1bf   :  { %v3401_v33 = vpop.eup %3400  ;;  %3402 = vrcp.f32 %v2075_v29  ;;  %v1992_v34 = vpop.f32.mrf.mxu3 }
 0x1c0   :  { %2090 = vst [vmem:[%s3657_s5 + $0x10] sm:$0xff] %v3401_v33  ;;  %3404 = vpow2.f32 %v2064_v32  ;;  %v1993_v37 = vadd.f32 %v1992_v34, %v1980_v30 }
 0x1c1   :  { %v1968_v23 = vpop.f32.mrf.mxu1 }
 0x1c2   :  { %v2053_v38 = vsub.f32 0.0, %v1993_v37 }
 0x1c4   :  { %v2066_v39 = vmul.f32 1.442695, %v2053_v38 }
 0x1c5   :  { %v3403_v57 = vpop.eup %3402 }
 0x1c6   :  { %v3405_v42 = vpop.eup %3404  ;;  %2091 = vst [vmem:[%s3657_s5 + $0x18] sm:$0xff] %v3403_v57  ;;  %3406 = vpow2.f32 %v2066_v39 }
 0x1c7   :  { %v2076_v43 = vadd.f32 1.0, %v3405_v42  ;;  %v1994_v44 = vpop.f32.mrf.mxu3 }
 0x1c9   :  { %3408 = vrcp.f32 %v2076_v43 }
 0x1cc   :  { %v3407_v5 = vpop.eup %3406 }
 0x1cd   :  { %v2077_v41 = vadd.f32 1.0, %v3407_v5 }
 0x1cf   :  { %v3409_v6 = vpop.eup %3408  ;;  %3410 = vrcp.f32 %v2077_v41 }
 0x1d0   :  { %2092 = vst [vmem:[%s3657_s5 + $0x20] sm:$0xff] %v3409_v6 }
 0x1d5   :  { %v3411_v1 = vpop.eup %3410 }
 0x1d6   :  { %2093 = vst [vmem:[%s3657_s5 + $0x28] sm:$0xff] %v3411_v1 }
 0x1d9   :  { %v2018_v48 = vpop.f32.mrf.mxu1 }
 0x1da   :  { %v2019_v45 = vadd.f32 %v2018_v48, %v2006_v47 }
 0x1dc   :  { %v2054_v51 = vsub.f32 0.0, %v2019_v45 }
 0x1de   :  { %v2068_v53 = vmul.f32 1.442695, %v2054_v51 }
 0x1df   :  { %v2044_v54 = vpop.f32.mrf.mxu3 }
 0x1e0   :  { %3412 = vpow2.f32 %v2068_v53  ;;  %v2045_v55 = vadd.f32 %v2044_v54, %v2032_v52 }
 0x1e1   :  { %v2020_v35 = vpop.f32.mrf.mxu1 }
 0x1e2   :  { %v2055_v59 = vsub.f32 0.0, %v2045_v55 }
 0x1e4   :  { %v2070_v60 = vmul.f32 1.442695, %v2055_v59 }
 0x1e6   :  { %v3413_v40 = vpop.eup %3412  ;;  %3414 = vpow2.f32 %v2070_v60 }
 0x1e7   :  { %v2078_v50 = vadd.f32 1.0, %v3413_v40  ;;  %v2046_v61 = vpop.f32.mrf.mxu3 }
 0x1e9   :  { %3416 = vrcp.f32 %v2078_v50 }
 0x1ec   :  { %v3415_v31 = vpop.eup %3414 }
 0x1ed   :  { %v2079_v62 = vadd.f32 1.0, %v3415_v31 }
 0x1ef   :  { %v3417_v36 = vpop.eup %3416  ;;  %3418 = vrcp.f32 %v2079_v62 }
 0x1f0   :  { %2094 = vst [vmem:[%s3657_s5 + $0x30] sm:$0xff] %v3417_v36 }
 0x1f5   :  { %v3419_v46 = vpop.eup %3418 }
 0x1f6   :  { %2095 = vst [vmem:[%s3657_s5 + $0x38] sm:$0xff] %v3419_v46 }
 0x1f7   :  { %2100 = vsyncpa [#allocation3], 1 }
 0x1f8   :  { %2101 = vsyncpa [#allocation5], 1 }

</bundles_post_ra>
